<compile_context>
chip_gen: v6e
topology: v6e:2x2x1
jax: 0.10.0
libtpu: 0.0.40
codegen_flags: <defaults>
</compile_context>

<pallas_src>
import functools
from math import sqrt

import jax
import jax.numpy as jnp
from jax.experimental import pallas as pl
from jax.experimental.pallas import tpu as pltpu


# ---------------------------------------------------------------------------
# Generation-aware defaults (VMEM budget, preferred tile sizes)
# ---------------------------------------------------------------------------
def _tpu_defaults():
    vmem_cap = None
    try:
        info = pltpu.get_tpu_info()
        vmem_cap = int(getattr(info, "vmem_capacity_bytes", 0)) or None
    except Exception:
        vmem_cap = None
    if vmem_cap is None or vmem_cap <= 64 * 1024 * 1024:
        # v7x-class (64 MiB VMEM) or unknown generation: conservative budget.
        return {"lq_pref": 256, "kv_pref": 512, "vmem_limit": 56 * 1024 * 1024}
    # v5e / v6e class (128 MiB VMEM): allow bigger tiles / more scoped VMEM.
    return {"lq_pref": 512, "kv_pref": 1024,
            "vmem_limit": min(100 * 1024 * 1024, int(vmem_cap * 0.8))}


def _pick_tile(total, preferred):
    """Largest multiple-of-8 divisor of `total` that is <= preferred."""
    if total <= preferred:
        return total
    t = (preferred // 8) * 8
    while t >= 8:
        if total % t == 0:
            return t
        t -= 8
    return total  # no nice divisor -> use the full dimension


# ---------------------------------------------------------------------------
# Pass 1: K/V projections, written once in head-major (B, H, S, E/D) layout
# ---------------------------------------------------------------------------
def _kv_proj_kernel(k_in_ref, v_in_ref, wk_ref, bk_ref, wv_ref, bv_ref,
                    kp_ref, vp_ref, *, n_heads, d_keys, d_values):
    H, E, D = n_heads, d_keys, d_values
    xk = k_in_ref[0]                                     # (St, d_model)
    xv = v_in_ref[0]
    kp = jnp.dot(xk, wk_ref[...], preferred_element_type=jnp.float32) + bk_ref[...]
    vp = jnp.dot(xv, wv_ref[...], preferred_element_type=jnp.float32) + bv_ref[...]
    # Head split done ONCE here (not per query tile / per S step).
    kh = jnp.stack([kp[:, h * E:(h + 1) * E] for h in range(H)], axis=0)
    vh = jnp.stack([vp[:, h * D:(h + 1) * D] for h in range(H)], axis=0)
    kp_ref[0] = kh.astype(kp_ref.dtype)                  # (H, St, E)
    vp_ref[0] = vh.astype(vp_ref.dtype)                  # (H, St, D)


# ---------------------------------------------------------------------------
# Pass 2: flash attention (online softmax over S tiles) + output projection
# ---------------------------------------------------------------------------
def _flash_attn_kernel(q_in_ref, kp_ref, vp_ref, wq_ref, bq_ref, wo_ref, bo_ref,
                       o_ref, q_scr, m_scr, l_scr, acc_scr,
                       *, n_heads, d_keys, d_values, scale, compute_dtype):
    H, E, D = n_heads, d_keys, d_values
    s_idx = pl.program_id(2)
    n_s = pl.num_programs(2)

    @pl.when(s_idx == 0)
    def _init():
        # Project Q once per (batch, query-tile) and cache it head-major.
        xq = q_in_ref[0]                                             # (Lt, d_model)
        qp = jnp.dot(xq, wq_ref[...],
                     preferred_element_type=jnp.float32) + bq_ref[...]  # (Lt, H*E)
        qh = jnp.stack([qp[:, h * E:(h + 1) * E] for h in range(H)], axis=0)
        q_scr[...] = qh.astype(compute_dtype)                        # (H, Lt, E)
        m_scr[...] = jnp.full(m_scr.shape, -jnp.inf, jnp.float32)
        l_scr[...] = jnp.zeros(l_scr.shape, jnp.float32)
        acc_scr[...] = jnp.zeros(acc_scr.shape, jnp.float32)

    kh = kp_ref[0]                                                   # (H, St, E)
    vh = vp_ref[0]                                                   # (H, St, D)

    # Batched-over-heads score matmul on the MXU, f32 accumulation.
    s = jnp.einsum("hqe,hke->hqk", q_scr[...], kh,
                   preferred_element_type=jnp.float32) * scale       # (H, Lt, St)

    # Online (flash) softmax update, all statistics in f32.
    m_prev = m_scr[...]
    m_new = jnp.maximum(m_prev, jnp.max(s, axis=-1, keepdims=True))
    alpha = jnp.exp(m_prev - m_new)
    p = jnp.exp(s - m_new)
    l_scr[...] = alpha * l_scr[...] + jnp.sum(p, axis=-1, keepdims=True)
    acc_scr[...] = alpha * acc_scr[...] + jnp.einsum(
        "hqk,hkd->hqd", p.astype(compute_dtype), vh,
        preferred_element_type=jnp.float32)
    m_scr[...] = m_new

    @pl.when(s_idx == n_s - 1)
    def _finalize():
        ctx = acc_scr[...] / l_scr[...]                              # (H, Lt, D)
        # Head-major concat along the lane axis, matching torch .view(B, L, -1).
        ctx2d = jnp.concatenate([ctx[h] for h in range(H)], axis=-1)  # (Lt, H*D)
        o_ref[0] = (jnp.dot(ctx2d.astype(compute_dtype), wo_ref[...],
                            preferred_element_type=jnp.float32)
                    + bo_ref[...]).astype(o_ref.dtype)


# ---------------------------------------------------------------------------
# Parameter init (mimics torch.nn.Linear defaults)
# ---------------------------------------------------------------------------
def init_attention_layer_params(key, d_model, n_heads, d_keys=None, d_values=None):
    d_keys = d_keys or d_model // n_heads
    d_values = d_values or d_model // n_heads

    def _linear_init(k, d_in, d_out):
        kw, kb = jax.random.split(k)
        bound = 1.0 / sqrt(d_in)
        w = jax.random.uniform(kw, (d_in, d_out), jnp.float32, -bound, bound)
        b = jax.random.uniform(kb, (d_out,), jnp.float32, -bound, bound)
        return w, b

    kq, kk, kv, ko = jax.random.split(key, 4)
    return {
        "wq": _linear_init(kq, d_model, d_keys * n_heads),
        "wk": _linear_init(kk, d_model, d_keys * n_heads),
        "wv": _linear_init(kv, d_model, d_values * n_heads),
        "wo": _linear_init(ko, d_values * n_heads, d_model),
        "n_heads": n_heads,
        "d_keys": d_keys,
        "d_values": d_values,
    }


# ---------------------------------------------------------------------------
# Forward wrapper: prologue K/V projection + flash attention pallas_calls
# ---------------------------------------------------------------------------
def attention_layer_forward(params, queries, keys, values, *,
                            q_block=None, kv_block=None,
                            compute_dtype=jnp.bfloat16):
    """queries: (B, L, d_model), keys/values: (B, S, d_model) -> (B, L, d_model)."""
    B, L, d_model = queries.shape
    S = keys.shape[1]
    H, E, D = params["n_heads"], params["d_keys"], params["d_values"]
    wq, bq = params["wq"]
    wk, bk = params["wk"]
    wv, bv = params["wv"]
    wo, bo = params["wo"]

    cfg = _tpu_defaults()
    Lt = (q_block if (q_block and L % q_block == 0 and q_block % 8 == 0)
          else _pick_tile(L, cfg["lq_pref"]))
    St = (kv_block if (kv_block and S % kv_block == 0 and kv_block % 8 == 0)
          else _pick_tile(S, cfg["kv_pref"]))
    n_l, n_s = L // Lt, S // St
    scale = 1.0 / sqrt(E)  # FullAttention default scale
    cd = compute_dtype

    # bf16 operands halve DMA/VMEM and run MXU-native; biases stay f32 (added
    # after the f32-accumulated matmul).
    q_in = queries.astype(cd)
    k_in = keys.astype(cd)
    v_in = values.astype(cd)
    wq_c, wk_c, wv_c, wo_c = (w.astype(cd) for w in (wq, wk, wv, wo))
    bq2 = bq.reshape(1, -1).astype(jnp.float32)
    bk2 = bk.reshape(1, -1).astype(jnp.float32)
    bv2 = bv.reshape(1, -1).astype(jnp.float32)
    bo2 = bo.reshape(1, -1).astype(jnp.float32)

    def _resident(shape, single_buffer):
        # Constant index_map: fetched once, stays VMEM-resident across the grid.
        idx = lambda *_: (0,) * len(shape)
        if single_buffer:
            return pl.BlockSpec(shape, idx, pipeline_mode=pl.Buffered(1))
        return pl.BlockSpec(shape, idx)

    def _project_kv(single_buffer):
        kern = functools.partial(_kv_proj_kernel, n_heads=H, d_keys=E, d_values=D)
        return pl.pallas_call(
            kern,
            out_shape=(jax.ShapeDtypeStruct((B, H, S, E), cd),
                       jax.ShapeDtypeStruct((B, H, S, D), cd)),
            grid=(B, n_s),
            in_specs=[
                pl.BlockSpec((1, St, d_model), lambda b, s: (b, s, 0)),  # keys
                pl.BlockSpec((1, St, d_model), lambda b, s: (b, s, 0)),  # values
                _resident((d_model, H * E), single_buffer),              # wk
                _resident((1, H * E), single_buffer),                    # bk
                _resident((d_model, H * D), single_buffer),              # wv
                _resident((1, H * D), single_buffer),                    # bv
            ],
            out_specs=(
                pl.BlockSpec((1, H, St, E), lambda b, s: (b, 0, s, 0)),
                pl.BlockSpec((1, H, St, D), lambda b, s: (b, 0, s, 0)),
            ),
            compiler_params=pltpu.CompilerParams(
                dimension_semantics=("parallel", "parallel"),
                vmem_limit_bytes=cfg["vmem_limit"]),
        )(k_in, v_in, wk_c, bk2, wv_c, bv2)

    def _attend(k_proj, v_proj, single_buffer):
        kern = functools.partial(_flash_attn_kernel, n_heads=H, d_keys=E,
                                 d_values=D, scale=scale, compute_dtype=cd)
        return pl.pallas_call(
            kern,
            out_shape=jax.ShapeDtypeStruct((B, L, d_model), jnp.float32),
            grid=(B, n_l, n_s),
            in_specs=[
                pl.BlockSpec((1, Lt, d_model), lambda b, lq, s: (b, lq, 0)),   # queries
                pl.BlockSpec((1, H, St, E), lambda b, lq, s: (b, 0, s, 0)),    # k_proj
                pl.BlockSpec((1, H, St, D), lambda b, lq, s: (b, 0, s, 0)),    # v_proj
                _resident((d_model, H * E), single_buffer),                    # wq
                _resident((1, H * E), single_buffer),                          # bq
                _resident((H * D, d_model), single_buffer),                    # wo
                _resident((1, d_model), single_buffer),                        # bo
            ],
            out_specs=pl.BlockSpec((1, Lt, d_model), lambda b, lq, s: (b, lq, 0)),
            scratch_shapes=[
                pltpu.VMEM((H, Lt, E), cd),            # cached projected Q
                pltpu.VMEM((H, Lt, 1), jnp.float32),   # running max
                pltpu.VMEM((H, Lt, 1), jnp.float32),   # running denom
                pltpu.VMEM((H, Lt, D), jnp.float32),   # output accumulator
            ],
            compiler_params=pltpu.CompilerParams(
                dimension_semantics=("parallel", "parallel", "arbitrary"),
                vmem_limit_bytes=cfg["vmem_limit"]),
        )(q_in, k_proj, v_proj, wq_c, bq2, wo_c, bo2)

    def _run(single_buffer):
        k_proj, v_proj = _project_kv(single_buffer)
        return _attend(k_proj, v_proj, single_buffer)

    try:
        return _run(True)
    except Exception:
        # pipeline_mode=pl.Buffered(1) not supported by this jax build;
        # fall back to default (double-buffered) weight specs.
        return _run(False)


# ---------------------------------------------------------------------------
# Reference (pure JAX) for sanity checking
# ---------------------------------------------------------------------------
def attention_layer_reference(params, queries, keys, values):
    B, L, d_model = queries.shape
    S = keys.shape[1]
    H, E, D = params["n_heads"], params["d_keys"], params["d_values"]
    wq, bq = params["wq"]
    wk, bk = params["wk"]
    wv, bv = params["wv"]
    wo, bo = params["wo"]

    q = (queries @ wq + bq).reshape(B, L, H, E)
    k = (keys @ wk + bk).reshape(B, S, H, E)
    v = (values @ wv + bv).reshape(B, S, H, D)
    scale = 1.0 / sqrt(E)
    scores = jnp.einsum("blhe,bshe->bhls", q, k)
    a = jax.nn.softmax(scale * scores, axis=-1)
    out = jnp.einsum("bhls,bshd->blhd", a, v).reshape(B, L, H * D)
    return out @ wo + bo


# ---------------------------------------------------------------------------
# Main
# ---------------------------------------------------------------------------
if __name__ == "__main__":
    key = jax.random.PRNGKey(0)
    k_par, k_q, k_k, k_v = jax.random.split(key, 4)

    # Small but lane-dense shapes: d_model (and H*E, H*D) are multiples of 128
    # so projection / output stores are full-lane unmasked writes.
    B, L, S = 2, 128, 256
    d_model, n_heads = 128, 4

    params = init_attention_layer_params(k_par, d_model, n_heads)
    queries = jax.random.normal(k_q, (B, L, d_model), jnp.float32)
    keys = jax.random.normal(k_k, (B, S, d_model), jnp.float32)
    values = jax.random.normal(k_v, (B, S, d_model), jnp.float32)

    ref = attention_layer_reference(params, queries, keys, values)

    # f32 compute path with forced small tiles: exercises the multi-step
    # online-softmax S loop and the query tiling; must match tightly.
    out_f32 = attention_layer_forward(params, queries, keys, values,
                                      q_block=64, kv_block=64,
                                      compute_dtype=jnp.float32)
    out_f32 = jax.block_until_ready(out_f32)
    assert out_f32.shape == (B, L, d_model)
    assert jnp.allclose(out_f32, ref, atol=1e-3, rtol=1e-3), "f32 path mismatch"

    # Default performance path: bf16 MXU operands, auto tile selection.
    out_bf16 = attention_layer_forward(params, queries, keys, values)
    out_bf16 = jax.block_until_ready(out_bf16)
    assert out_bf16.shape == (B, L, d_model)
    assert jnp.allclose(out_bf16, ref, atol=3e-2, rtol=3e-2), "bf16 path mismatch"

    print("KERNEL_OK")
</pallas_src>

<mosaic_0001>
module attributes {stable_mosaic.version = 11 : i64} {
  func.func @_kv_proj_kernel(%arg0: i32, %arg1: i32, %arg2: memref<1x64x128xf32, #tpu.memory_space<vmem>>, %arg3: memref<1x64x128xf32, #tpu.memory_space<vmem>>, %arg4: memref<128x128xf32, #tpu.memory_space<vmem>>, %arg5: memref<1x128xf32, #tpu.memory_space<vmem>>, %arg6: memref<128x128xf32, #tpu.memory_space<vmem>>, %arg7: memref<1x128xf32, #tpu.memory_space<vmem>>, %arg8: memref<1x4x64x32xf32, #tpu.memory_space<vmem>>, %arg9: memref<1x4x64x32xf32, #tpu.memory_space<vmem>>) attributes {dimension_semantics = [#tpu.dimension_semantics<parallel>, #tpu.dimension_semantics<parallel>], iteration_bounds = array<i64: 2, 4>, scalar_prefetch = 0 : i64, scratch_operands = 0 : i64, tpu.core_type = #tpu.core_type<tc>, window_params = [{transform_indices = @transform_0, window_bounds = array<i64: 1, 64, 128>}, {transform_indices = @transform_1, window_bounds = array<i64: 1, 64, 128>}, {pipeline_mode = #tpu.pipeline_mode<synchronous>, transform_indices = @transform_2, window_bounds = array<i64: 128, 128>}, {pipeline_mode = #tpu.pipeline_mode<synchronous>, transform_indices = @transform_3, window_bounds = array<i64: 1, 128>}, {pipeline_mode = #tpu.pipeline_mode<synchronous>, transform_indices = @transform_4, window_bounds = array<i64: 128, 128>}, {pipeline_mode = #tpu.pipeline_mode<synchronous>, transform_indices = @transform_5, window_bounds = array<i64: 1, 128>}, {transform_indices = @transform_6, window_bounds = array<i64: 1, 4, 64, 32>}, {transform_indices = @transform_7, window_bounds = array<i64: 1, 4, 64, 32>}]} {
    %c0 = arith.constant 0 : index
    %c0_0 = arith.constant 0 : index
    %c0_1 = arith.constant 0 : index
    %0 = vector.load %arg2[%c0, %c0_0, %c0_1] : memref<1x64x128xf32, #tpu.memory_space<vmem>>, vector<1x64x128xf32>
    %1 = vector.shape_cast %0 : vector<1x64x128xf32> to vector<64x128xf32>
    %c0_2 = arith.constant 0 : index
    %c0_3 = arith.constant 0 : index
    %c0_4 = arith.constant 0 : index
    %2 = vector.load %arg3[%c0_2, %c0_3, %c0_4] : memref<1x64x128xf32, #tpu.memory_space<vmem>>, vector<1x64x128xf32>
    %3 = vector.shape_cast %2 : vector<1x64x128xf32> to vector<64x128xf32>
    %c0_5 = arith.constant 0 : index
    %c0_6 = arith.constant 0 : index
    %4 = vector.load %arg4[%c0_5, %c0_6] : memref<128x128xf32, #tpu.memory_space<vmem>>, vector<128x128xf32>
    %cst = arith.constant dense<0.000000e+00> : vector<64x128xf32>
    %5 = tpu.matmul %1, %4, %cst {dimension_numbers = #tpu.dot_dimension_numbers<[1], [0], [0], [1], [0, 0, 1, 1], [], []>} : vector<64x128xf32>, vector<128x128xf32>, vector<64x128xf32> -> vector<64x128xf32>
    %c0_7 = arith.constant 0 : index
    %c0_8 = arith.constant 0 : index
    %6 = vector.load %arg5[%c0_7, %c0_8] : memref<1x128xf32, #tpu.memory_space<vmem>>, vector<1x128xf32>
    %7 = vector.broadcast %6 : vector<1x128xf32> to vector<64x128xf32>
    %8 = arith.addf %5, %7 : vector<64x128xf32>
    %c0_9 = arith.constant 0 : index
    %c0_10 = arith.constant 0 : index
    %9 = vector.load %arg6[%c0_9, %c0_10] : memref<128x128xf32, #tpu.memory_space<vmem>>, vector<128x128xf32>
    %cst_11 = arith.constant dense<0.000000e+00> : vector<64x128xf32>
    %10 = tpu.matmul %3, %9, %cst_11 {dimension_numbers = #tpu.dot_dimension_numbers<[1], [0], [0], [1], [0, 0, 1, 1], [], []>} : vector<64x128xf32>, vector<128x128xf32>, vector<64x128xf32> -> vector<64x128xf32>
    %c0_12 = arith.constant 0 : index
    %c0_13 = arith.constant 0 : index
    %11 = vector.load %arg7[%c0_12, %c0_13] : memref<1x128xf32, #tpu.memory_space<vmem>>, vector<1x128xf32>
    %12 = vector.broadcast %11 : vector<1x128xf32> to vector<64x128xf32>
    %13 = arith.addf %10, %12 : vector<64x128xf32>
    %14 = vector.extract_strided_slice %8 {offsets = [0, 0], sizes = [64, 32], strides = [1, 1]} : vector<64x128xf32> to vector<64x32xf32>
    %15 = vector.extract_strided_slice %8 {offsets = [0, 32], sizes = [64, 32], strides = [1, 1]} : vector<64x128xf32> to vector<64x32xf32>
    %16 = vector.extract_strided_slice %8 {offsets = [0, 64], sizes = [64, 32], strides = [1, 1]} : vector<64x128xf32> to vector<64x32xf32>
    %17 = vector.extract_strided_slice %8 {offsets = [0, 96], sizes = [64, 32], strides = [1, 1]} : vector<64x128xf32> to vector<64x32xf32>
    %18 = vector.shape_cast %14 : vector<64x32xf32> to vector<1x64x32xf32>
    %19 = vector.shape_cast %15 : vector<64x32xf32> to vector<1x64x32xf32>
    %20 = vector.shape_cast %16 : vector<64x32xf32> to vector<1x64x32xf32>
    %21 = vector.shape_cast %17 : vector<64x32xf32> to vector<1x64x32xf32>
    %22 = tpu.concatenate %18, %19, %20, %21 in 0 : vector<1x64x32xf32>, vector<1x64x32xf32>, vector<1x64x32xf32>, vector<1x64x32xf32> -> vector<4x64x32xf32>
    %23 = vector.extract_strided_slice %13 {offsets = [0, 0], sizes = [64, 32], strides = [1, 1]} : vector<64x128xf32> to vector<64x32xf32>
    %24 = vector.extract_strided_slice %13 {offsets = [0, 32], sizes = [64, 32], strides = [1, 1]} : vector<64x128xf32> to vector<64x32xf32>
    %25 = vector.extract_strided_slice %13 {offsets = [0, 64], sizes = [64, 32], strides = [1, 1]} : vector<64x128xf32> to vector<64x32xf32>
    %26 = vector.extract_strided_slice %13 {offsets = [0, 96], sizes = [64, 32], strides = [1, 1]} : vector<64x128xf32> to vector<64x32xf32>
    %27 = vector.shape_cast %23 : vector<64x32xf32> to vector<1x64x32xf32>
    %28 = vector.shape_cast %24 : vector<64x32xf32> to vector<1x64x32xf32>
    %29 = vector.shape_cast %25 : vector<64x32xf32> to vector<1x64x32xf32>
    %30 = vector.shape_cast %26 : vector<64x32xf32> to vector<1x64x32xf32>
    %31 = tpu.concatenate %27, %28, %29, %30 in 0 : vector<1x64x32xf32>, vector<1x64x32xf32>, vector<1x64x32xf32>, vector<1x64x32xf32> -> vector<4x64x32xf32>
    %c0_14 = arith.constant 0 : index
    %c0_15 = arith.constant 0 : index
    %c0_16 = arith.constant 0 : index
    %c0_17 = arith.constant 0 : index
    %32 = vector.load %arg8[%c0_14, %c0_15, %c0_16, %c0_17] : memref<1x4x64x32xf32, #tpu.memory_space<vmem>>, vector<1x4x64x32xf32>
    %33 = vector.shape_cast %32 : vector<1x4x64x32xf32> to vector<4x64x32xf32>
    %34 = vector.shape_cast %22 : vector<4x64x32xf32> to vector<1x4x64x32xf32>
    tpu.vector_store %arg8[%c0_14, %c0_15, %c0_16, %c0_17], %34 {strides = array<i32>} : memref<1x4x64x32xf32, #tpu.memory_space<vmem>>, vector<1x4x64x32xf32>,
    %c0_18 = arith.constant 0 : index
    %c0_19 = arith.constant 0 : index
    %c0_20 = arith.constant 0 : index
    %c0_21 = arith.constant 0 : index
    %35 = vector.load %arg9[%c0_18, %c0_19, %c0_20, %c0_21] : memref<1x4x64x32xf32, #tpu.memory_space<vmem>>, vector<1x4x64x32xf32>
    %36 = vector.shape_cast %35 : vector<1x4x64x32xf32> to vector<4x64x32xf32>
    %37 = vector.shape_cast %31 : vector<4x64x32xf32> to vector<1x4x64x32xf32>
    tpu.vector_store %arg9[%c0_18, %c0_19, %c0_20, %c0_21], %37 {strides = array<i32>} : memref<1x4x64x32xf32, #tpu.memory_space<vmem>>, vector<1x4x64x32xf32>,
    return
  }
  func.func @transform_0(%arg0: i32, %arg1: i32) -> (i32, i32, i32) {
    %c0_i32 = arith.constant 0 : i32
    %c0_i32_0 = arith.constant 0 : i32
    return %arg0, %arg1, %c0_i32 : i32, i32, i32
  }
  func.func @transform_1(%arg0: i32, %arg1: i32) -> (i32, i32, i32) {
    %c0_i32 = arith.constant 0 : i32
    %c0_i32_0 = arith.constant 0 : i32
    return %arg0, %arg1, %c0_i32 : i32, i32, i32
  }
  func.func @transform_2(%arg0: i32, %arg1: i32) -> (i32, i32) {
    %c0_i32 = arith.constant 0 : i32
    %c0_i32_0 = arith.constant 0 : i32
    %c0_i32_1 = arith.constant 0 : i32
    return %c0_i32, %c0_i32_0 : i32, i32
  }
  func.func @transform_3(%arg0: i32, %arg1: i32) -> (i32, i32) {
    %c0_i32 = arith.constant 0 : i32
    %c0_i32_0 = arith.constant 0 : i32
    %c0_i32_1 = arith.constant 0 : i32
    return %c0_i32, %c0_i32_0 : i32, i32
  }
  func.func @transform_4(%arg0: i32, %arg1: i32) -> (i32, i32) {
    %c0_i32 = arith.constant 0 : i32
    %c0_i32_0 = arith.constant 0 : i32
    %c0_i32_1 = arith.constant 0 : i32
    return %c0_i32, %c0_i32_0 : i32, i32
  }
  func.func @transform_5(%arg0: i32, %arg1: i32) -> (i32, i32) {
    %c0_i32 = arith.constant 0 : i32
    %c0_i32_0 = arith.constant 0 : i32
    %c0_i32_1 = arith.constant 0 : i32
    return %c0_i32, %c0_i32_0 : i32, i32
  }
  func.func @transform_6(%arg0: i32, %arg1: i32) -> (i32, i32, i32, i32) {
    %c0_i32 = arith.constant 0 : i32
    %c0_i32_0 = arith.constant 0 : i32
    %c0_i32_1 = arith.constant 0 : i32
    return %arg0, %c0_i32, %arg1, %c0_i32_0 : i32, i32, i32, i32
  }
  func.func @transform_7(%arg0: i32, %arg1: i32) -> (i32, i32, i32, i32) {
    %c0_i32 = arith.constant 0 : i32
    %c0_i32_0 = arith.constant 0 : i32
    %c0_i32_1 = arith.constant 0 : i32
    return %arg0, %c0_i32, %arg1, %c0_i32_0 : i32, i32, i32, i32
  }
}

module attributes {stable_mosaic.version = 11 : i64} {
  func.func @_kv_proj_kernel(%arg0: i32, %arg1: i32, %arg2: memref<1x64x128xf32, #tpu.memory_space<vmem>>, %arg3: memref<1x64x128xf32, #tpu.memory_space<vmem>>, %arg4: memref<128x128xf32, #tpu.memory_space<vmem>>, %arg5: memref<1x128xf32, #tpu.memory_space<vmem>>, %arg6: memref<128x128xf32, #tpu.memory_space<vmem>>, %arg7: memref<1x128xf32, #tpu.memory_space<vmem>>, %arg8: memref<1x4x64x32xf32, #tpu.memory_space<vmem>>, %arg9: memref<1x4x64x32xf32, #tpu.memory_space<vmem>>) attributes {dimension_semantics = [#tpu.dimension_semantics<parallel>, #tpu.dimension_semantics<parallel>], iteration_bounds = array<i64: 2, 4>, scalar_prefetch = 0 : i64, scratch_operands = 0 : i64, tpu.core_type = #tpu.core_type<tc>, window_params = [{transform_indices = @transform_0, window_bounds = array<i64: 1, 64, 128>}, {transform_indices = @transform_1, window_bounds = array<i64: 1, 64, 128>}, {pipeline_mode = #tpu.pipeline_mode<synchronous>, transform_indices = @transform_2, window_bounds = array<i64: 128, 128>}, {pipeline_mode = #tpu.pipeline_mode<synchronous>, transform_indices = @transform_3, window_bounds = array<i64: 1, 128>}, {pipeline_mode = #tpu.pipeline_mode<synchronous>, transform_indices = @transform_4, window_bounds = array<i64: 128, 128>}, {pipeline_mode = #tpu.pipeline_mode<synchronous>, transform_indices = @transform_5, window_bounds = array<i64: 1, 128>}, {transform_indices = @transform_6, window_bounds = array<i64: 1, 4, 64, 32>}, {transform_indices = @transform_7, window_bounds = array<i64: 1, 4, 64, 32>}]} {
    %c0 = arith.constant 0 : index
    %c0_0 = arith.constant 0 : index
    %c0_1 = arith.constant 0 : index
    %0 = vector.load %arg2[%c0, %c0_0, %c0_1] : memref<1x64x128xf32, #tpu.memory_space<vmem>>, vector<1x64x128xf32>
    %1 = vector.shape_cast %0 : vector<1x64x128xf32> to vector<64x128xf32>
    %c0_2 = arith.constant 0 : index
    %c0_3 = arith.constant 0 : index
    %c0_4 = arith.constant 0 : index
    %2 = vector.load %arg3[%c0_2, %c0_3, %c0_4] : memref<1x64x128xf32, #tpu.memory_space<vmem>>, vector<1x64x128xf32>
    %3 = vector.shape_cast %2 : vector<1x64x128xf32> to vector<64x128xf32>
    %c0_5 = arith.constant 0 : index
    %c0_6 = arith.constant 0 : index
    %4 = vector.load %arg4[%c0_5, %c0_6] : memref<128x128xf32, #tpu.memory_space<vmem>>, vector<128x128xf32>
    %cst = arith.constant dense<0.000000e+00> : vector<64x128xf32>
    %5 = tpu.matmul %1, %4, %cst {dimension_numbers = #tpu.dot_dimension_numbers<[1], [0], [0], [1], [0, 0, 1, 1], [], []>} : vector<64x128xf32>, vector<128x128xf32>, vector<64x128xf32> -> vector<64x128xf32>
    %c0_7 = arith.constant 0 : index
    %c0_8 = arith.constant 0 : index
    %6 = vector.load %arg5[%c0_7, %c0_8] : memref<1x128xf32, #tpu.memory_space<vmem>>, vector<1x128xf32>
    %7 = vector.broadcast %6 : vector<1x128xf32> to vector<64x128xf32>
    %8 = arith.addf %5, %7 : vector<64x128xf32>
    %c0_9 = arith.constant 0 : index
    %c0_10 = arith.constant 0 : index
    %9 = vector.load %arg6[%c0_9, %c0_10] : memref<128x128xf32, #tpu.memory_space<vmem>>, vector<128x128xf32>
    %cst_11 = arith.constant dense<0.000000e+00> : vector<64x128xf32>
    %10 = tpu.matmul %3, %9, %cst_11 {dimension_numbers = #tpu.dot_dimension_numbers<[1], [0], [0], [1], [0, 0, 1, 1], [], []>} : vector<64x128xf32>, vector<128x128xf32>, vector<64x128xf32> -> vector<64x128xf32>
    %c0_12 = arith.constant 0 : index
    %c0_13 = arith.constant 0 : index
    %11 = vector.load %arg7[%c0_12, %c0_13] : memref<1x128xf32, #tpu.memory_space<vmem>>, vector<1x128xf32>
    %12 = vector.broadcast %11 : vector<1x128xf32> to vector<64x128xf32>
    %13 = arith.addf %10, %12 : vector<64x128xf32>
    %14 = vector.extract_strided_slice %8 {offsets = [0, 0], sizes = [64, 32], strides = [1, 1]} : vector<64x128xf32> to vector<64x32xf32>
    %15 = vector.extract_strided_slice %8 {offsets = [0, 32], sizes = [64, 32], strides = [1, 1]} : vector<64x128xf32> to vector<64x32xf32>
    %16 = vector.extract_strided_slice %8 {offsets = [0, 64], sizes = [64, 32], strides = [1, 1]} : vector<64x128xf32> to vector<64x32xf32>
    %17 = vector.extract_strided_slice %8 {offsets = [0, 96], sizes = [64, 32], strides = [1, 1]} : vector<64x128xf32> to vector<64x32xf32>
    %18 = vector.shape_cast %14 : vector<64x32xf32> to vector<1x64x32xf32>
    %19 = vector.shape_cast %15 : vector<64x32xf32> to vector<1x64x32xf32>
    %20 = vector.shape_cast %16 : vector<64x32xf32> to vector<1x64x32xf32>
    %21 = vector.shape_cast %17 : vector<64x32xf32> to vector<1x64x32xf32>
    %22 = tpu.concatenate %18, %19, %20, %21 in 0 : vector<1x64x32xf32>, vector<1x64x32xf32>, vector<1x64x32xf32>, vector<1x64x32xf32> -> vector<4x64x32xf32>
    %23 = vector.extract_strided_slice %13 {offsets = [0, 0], sizes = [64, 32], strides = [1, 1]} : vector<64x128xf32> to vector<64x32xf32>
    %24 = vector.extract_strided_slice %13 {offsets = [0, 32], sizes = [64, 32], strides = [1, 1]} : vector<64x128xf32> to vector<64x32xf32>
    %25 = vector.extract_strided_slice %13 {offsets = [0, 64], sizes = [64, 32], strides = [1, 1]} : vector<64x128xf32> to vector<64x32xf32>
    %26 = vector.extract_strided_slice %13 {offsets = [0, 96], sizes = [64, 32], strides = [1, 1]} : vector<64x128xf32> to vector<64x32xf32>
    %27 = vector.shape_cast %23 : vector<64x32xf32> to vector<1x64x32xf32>
    %28 = vector.shape_cast %24 : vector<64x32xf32> to vector<1x64x32xf32>
    %29 = vector.shape_cast %25 : vector<64x32xf32> to vector<1x64x32xf32>
    %30 = vector.shape_cast %26 : vector<64x32xf32> to vector<1x64x32xf32>
    %31 = tpu.concatenate %27, %28, %29, %30 in 0 : vector<1x64x32xf32>, vector<1x64x32xf32>, vector<1x64x32xf32>, vector<1x64x32xf32> -> vector<4x64x32xf32>
    %c0_14 = arith.constant 0 : index
    %c0_15 = arith.constant 0 : index
    %c0_16 = arith.constant 0 : index
    %c0_17 = arith.constant 0 : index
    %32 = vector.load %arg8[%c0_14, %c0_15, %c0_16, %c0_17] : memref<1x4x64x32xf32, #tpu.memory_space<vmem>>, vector<1x4x64x32xf32>
    %33 = vector.shape_cast %32 : vector<1x4x64x32xf32> to vector<4x64x32xf32>
    %34 = vector.shape_cast %22 : vector<4x64x32xf32> to vector<1x4x64x32xf32>
    tpu.vector_store %arg8[%c0_14, %c0_15, %c0_16, %c0_17], %34 {strides = array<i32>} : memref<1x4x64x32xf32, #tpu.memory_space<vmem>>, vector<1x4x64x32xf32>,
    %c0_18 = arith.constant 0 : index
    %c0_19 = arith.constant 0 : index
    %c0_20 = arith.constant 0 : index
    %c0_21 = arith.constant 0 : index
    %35 = vector.load %arg9[%c0_18, %c0_19, %c0_20, %c0_21] : memref<1x4x64x32xf32, #tpu.memory_space<vmem>>, vector<1x4x64x32xf32>
    %36 = vector.shape_cast %35 : vector<1x4x64x32xf32> to vector<4x64x32xf32>
    %37 = vector.shape_cast %31 : vector<4x64x32xf32> to vector<1x4x64x32xf32>
    tpu.vector_store %arg9[%c0_18, %c0_19, %c0_20, %c0_21], %37 {strides = array<i32>} : memref<1x4x64x32xf32, #tpu.memory_space<vmem>>, vector<1x4x64x32xf32>,
    return
  }
  func.func @transform_0(%arg0: i32, %arg1: i32) -> (i32, i32, i32) {
    %c0_i32 = arith.constant 0 : i32
    %c0_i32_0 = arith.constant 0 : i32
    return %arg0, %arg1, %c0_i32 : i32, i32, i32
  }
  func.func @transform_1(%arg0: i32, %arg1: i32) -> (i32, i32, i32) {
    %c0_i32 = arith.constant 0 : i32
    %c0_i32_0 = arith.constant 0 : i32
    return %arg0, %arg1, %c0_i32 : i32, i32, i32
  }
  func.func @transform_2(%arg0: i32, %arg1: i32) -> (i32, i32) {
    %c0_i32 = arith.constant 0 : i32
    %c0_i32_0 = arith.constant 0 : i32
    %c0_i32_1 = arith.constant 0 : i32
    return %c0_i32, %c0_i32_0 : i32, i32
  }
  func.func @transform_3(%arg0: i32, %arg1: i32) -> (i32, i32) {
    %c0_i32 = arith.constant 0 : i32
    %c0_i32_0 = arith.constant 0 : i32
    %c0_i32_1 = arith.constant 0 : i32
    return %c0_i32, %c0_i32_0 : i32, i32
  }
  func.func @transform_4(%arg0: i32, %arg1: i32) -> (i32, i32) {
    %c0_i32 = arith.constant 0 : i32
    %c0_i32_0 = arith.constant 0 : i32
    %c0_i32_1 = arith.constant 0 : i32
    return %c0_i32, %c0_i32_0 : i32, i32
  }
  func.func @transform_5(%arg0: i32, %arg1: i32) -> (i32, i32) {
    %c0_i32 = arith.constant 0 : i32
    %c0_i32_0 = arith.constant 0 : i32
    %c0_i32_1 = arith.constant 0 : i32
    return %c0_i32, %c0_i32_0 : i32, i32
  }
  func.func @transform_6(%arg0: i32, %arg1: i32) -> (i32, i32, i32, i32) {
    %c0_i32 = arith.constant 0 : i32
    %c0_i32_0 = arith.constant 0 : i32
    %c0_i32_1 = arith.constant 0 : i32
    return %arg0, %c0_i32, %arg1, %c0_i32_0 : i32, i32, i32, i32
  }
  func.func @transform_7(%arg0: i32, %arg1: i32) -> (i32, i32, i32, i32) {
    %c0_i32 = arith.constant 0 : i32
    %c0_i32_0 = arith.constant 0 : i32
    %c0_i32_1 = arith.constant 0 : i32
    return %arg0, %c0_i32, %arg1, %c0_i32_0 : i32, i32, i32, i32
  }
}

</mosaic_0001>

<bundles_post_ra>
// kernel: tpu_custom_call.1
= control target key start
LH: loop header
LB: loop body
LE: loop exit
PB: predicated region body
PF: predicated region fallthrough
CT: control target
= control target key end

     0   :  { %s2456_s0 = inlined_call_operand.hbm [shape: f32[2,256,128], index: 0, kind: input, shape index: {}]   ;;  %s2457_s1 = inlined_call_operand.hbm [shape: f32[2,256,128], index: 1, kind: input, shape index: {}]   ;;  %s2458_s2 = inlined_call_operand.hbm [shape: f32[128,128], index: 2, kind: input, shape index: {}]   ;;  %s2459_s3 = inlined_call_operand.vmem [shape: f32[1,128], index: 3, kind: input, shape index: {}]   ;;  %s2460_s4 = inlined_call_operand.hbm [shape: f32[128,128], index: 4, kind: input, shape index: {}]   ;;  %s2461_s5 = inlined_call_operand.vmem [shape: f32[1,128], index: 5, kind: input, shape index: {}]   ;;  %s2462_s6 = inlined_call_operand.vmem [shape: f32[2,4,256,32], index: 6, kind: output, shape index: {0}]   ;;  %s2463_s7 = inlined_call_operand.vmem [shape: f32[2,4,256,32], index: 7, kind: output, shape index: {1}]  }
   0x1   :  { %2471 = sst [smem:[#allocation18_spill]] %s2458_s2 }
   0x2   :  { %2472 = sst [smem:[#allocation19_spill]] %s2460_s4 }
   0x3   :  { %2473 = sst [smem:[#allocation20_spill]] %s2462_s6 }
   0x4   :  { %2474 = sst [smem:[#allocation21_spill]] %s2463_s7 }
   0x5   :  { %13 = vsyncpa [#allocation3], 0 }
   0x6   :  { %15 = vsyncpa [#allocation3 + $0x1], 0 }
   0x7   :  { %16 = vsyncpa [#allocation5], 0 }
   0x8   :  { %18 = vsyncpa [#allocation5 + $0x1], 0 }
   0x9   :  { %19 = vsyncpa [#allocation8], 0  ;;  %s1895_s24 = smov 0   ;;  %s1897_s25 = smov 0  }
   0xa   :  { %s1899_s26 = smov 0   ;;  %s1901_s27 = smov 0  }
   0xb   :  { %s1903_s28 = smov 0   ;;  %s1905_s29 = smov 0  }
   0xc   :  { %s1907_s30 = smov 0   ;;  %s1909_s8 = smov 0  }
   0xd LB: > { %2475 = sst [smem:[#allocation15_spill]] %s1840_s30  ;;  %s1934_s9 = sadd.s32 4294967295, %s1844_s8   ;;  %s1844_s8 = sphi %s1909_s8, %s25_s8   ;;  %s1840_s30 = sphi %s1907_s30, %s2492_s30   ;;  %s1836_s29 = sphi %s1905_s29, %s2497_s29   ;;  %s1832_s28 = sphi %s1903_s28, %s2490_s28   ;;  %s1828_s27 = sphi %s1901_s27, %s2496_s27   ;;  %s1824_s26 = sphi %s1899_s26, %s2495_s26   ;;  %s1820_s25 = sphi %s1897_s25, %s2494_s25   ;;  %s1816_s24 = sphi %s1895_s24, %s2493_s24  }
   0xe   : > { %p59_p0 = scmp.ne.s32.totalorder %s1820_s25, %s1816_s24  ;;  %p60_p1 = scmp.eq.s32.totalorder %s1934_s9, 0 }
   0xf   : > { %p197_p2 = scmp.eq.s32.totalorder %s1934_s9, 7  ;;  %p1389_p3 = scmp.ge.s32.totalorder %s1844_s8, 1 }
  0x10   : > { %p238_p4 = scmp.lt.s32.totalorder %s1844_s8, 9  ;;  %p1943_p5 = por %p60_p1, %p59_p0 }
  0x11   : > { %s1846_s12 = smov [#allocation6]   ;;  %s1847_s15 = smov [#allocation7]  }
  0x12   : > { %p1947_p6 = pnand %p1389_p3, %p238_p4  ;;  %s250_s13 = sshll.u32 %s1846_s12, 4  ;;  %s251_s13 = int_to_ptr.vmem [resolvable:$true] %s250_s13 }
  0x13   : > { %s266_s16 = sshll.u32 %s1847_s15, 4  ;;  %s1669_s17 = scalar_lea.vmem %s251_s13, 2048  ;;  %s267_s16 = int_to_ptr.vmem [resolvable:$true] %s266_s16 }
  0x14   : > { %p1568_p7 = pneg %p1947_p6  ;;  %p1670_p10 = scmp.ne.s32.totalorder %s251_s13, %s1669_s17 }
  0x15   : > { %p1677_p13 = scmp.lt.s32.totalorder %s251_s13, %s251_s13  ;;  %p1678_p0 = scmp.lt.s32.totalorder %s1669_s17, %s1669_s17 }
  0x16   : > { %p1955_p8 = pnand %p1568_p7, %p60_p1 }
  0x17   : > { %p1679_p3 = por %p1678_p0, %p1677_p13 }
  0x18   : > { %p1660_p9 = pneg %p1955_p8 }
  0x1a   : > { %p1672_p11 = pnand %p1670_p10, %p1660_p9 }
  0x1c   : > { %p1673_p12 = pneg %p1672_p11 }
  0x1e   : > { %p1680_p4 = pnand %p1679_p3, %p1673_p12 }
  0x20   : > { %1683 = shalt.err (!%p1680_p4)
}
  0x21   : > { %s2464_s18 = smov 128   ;;  %s2466_s19 = smov 8  }
  0x22   : > { %s2479_s2 = sld [smem:[#allocation18_spill]]  ;;  %s1695_s22 = scalar_lea.vmem %s267_s16, 2048 }
  0x23   : > { %p1696_p7 = scmp.ne.s32.totalorder %s267_s16, %s1695_s22  ;;  %p1703_p12 = scmp.lt.s32.totalorder %s267_s16, %s267_s16 }
  0x24   : > { %p1704_p13 = scmp.lt.s32.totalorder %s1695_s22, %s1695_s22 }
  0x25   : > { %p1698_p10 = pnand %p1696_p7, %p1660_p9 }
  0x26   : > { %p1705_p0 = por %p1704_p13, %p1703_p12 }
  0x27   : > { %p1699_p11 = pneg %p1698_p10 }
  0x28   : > { %1571 = dma.hbm_to_vmem [thread:$0]  (!%p1955_p8), %s2479_s2, 2048, %s251_s13, [#allocation5], %s2464_s18, %s2464_s18, %s2466_s19  }
  0x29   : > { %p1706_p3 = pnand %p1705_p0, %p1699_p11 }
  0x2b   : > { %1709 = shalt.err (!%p1706_p3)
}
  0x2c   : > { %s2480_s4 = sld [smem:[#allocation19_spill]]  ;;  %s34_s12 = sadd.s32 1, %s1836_s29 }
  0x2d   : > { %p35_p9 = scmp.ge.s32.totalorder %s34_s12, 4  ;;  %s37_s13 = sadd.s32 1, %s1840_s30 }
  0x2e   : > { %s46_s14 = sadd.s32 1, %s1824_s26  ;;  %p53_p4 = scmp.ne.s32.totalorder %s1824_s26, %s1820_s25 }
  0x2f   : > { %s2499_s12 = smov (%p35_p9, %s34_s12), 0  ;;  %s2501_s13 = smov (!%p35_p9, %s37_s13), %s1840_s30 }
  0x30   : > { %2481 = sst [smem:[#allocation16_spill]] %s2499_s12  ;;  %s42_s15 = ssub.s32 %s1836_s29, %s2499_s12 }
  0x31   : > { %p54_p7 = scmp.eq.s32.totalorder %s1844_s8, 0  ;;  %p39_p10 = scmp.ge.s32.totalorder %s2501_s13, 2 }
  0x32   : > { %1574 = dma.hbm_to_vmem [thread:$0]  (!%p1955_p8), %s2480_s4, 2048, %s267_s16, [#allocation8], %s2464_s18, %s2464_s18, %s2466_s19  }
  0x33   : > { %p1996_p11 = por %p197_p2, %p53_p4  ;;  %p2000_p8 = por %p54_p7, %p53_p4 }
  0x34   : > { %p1584_p12 = scmp.lt.s32.totalorder %s1844_s8, 8  ;;  %s2503_s13 = smov (%p39_p10, %s2501_s13), 0 }
  0x35   : > { %2484 = sst [smem:[#allocation17_spill]] %s2503_s13  ;;  %s283_s20 = sand.u32 1, %s1824_s26  }
  0x36   : > { %s1394_s21 = sshll.u32 %s1836_s29, 3  ;;  %s41_s22 = ssub.s32 %s1840_s30, %s2503_s13 }
  0x37   : > { %s43_s23 = sor.u32 %s42_s15, %s41_s22  ;;  %s2011_s24 = sshll.u32 %s283_s20, 6 }
  0x38   : > { %p44_p2 = scmp.eq.s32.totalorder %s43_s23, 0  ;;  %s1395_s18 = sshll.u32 %s1840_s30, 5 }
  0x39   : > { %s287_s19 = scalar_lea.vmem [#allocation2], %s2011_s24  ;;  %s293_s12 = sadd.s32 %s1395_s18, %s1394_s21 }
  0x3a   : > { %s296_s2 = sshll.u32 %s287_s19, 4  ;;  %s1396_s7 = sshll.u32 %s293_s12, 7  ;;  %s297_s2 = int_to_ptr.vmem [resolvable:$true] %s296_s2 }
  0x3b   : > { %s2016_s4 = scalar_select %p44_p2, %s1824_s26, %s46_s14  }
  0x3c   : > { %p2022_p13 = pnand %p1584_p12, %p2000_p8  ;;  %s295_s22 = scalar_lea.hbm %s2456_s0, %s1396_s7 }
  0x3d   : > { %s2032_s19 = scalar_lea.hbm %s2457_s1, %s1396_s7  ;;  %s284_s18 = scalar_lea.sflag [#allocation3], %s283_s20 }
  0x3e   : > { %p1712_p0 = pneg %p2022_p13  ;;  %s1723_s12 = scalar_lea.vmem %s297_s2, 1024 }
  0x3f   : > { %p1724_p3 = scmp.ne.s32.totalorder %s297_s2, %s1723_s12  ;;  %s1850_s14 = smov [#allocation2]  }
  0x40   : > { %s1728_s16 = sshll.u32 %s1850_s14, 4  ;;  %s1729_s16 = int_to_ptr.vmem [resolvable:$false] %s1728_s16 }
  0x41   : > { %p1726_p9 = pnand %p1724_p3, %p1712_p0  ;;  %s1730_s13 = scalar_lea.vmem %s1729_s16, 2048 }
  0x42   : > { %p1731_p7 = scmp.lt.s32.totalorder %s297_s2, %s1729_s16  ;;  %p1732_p10 = scmp.lt.s32.totalorder %s1730_s13, %s1723_s12 }
  0x43   : > { %p1727_p4 = pneg %p1726_p9 }
  0x44   : > { %p1733_p8 = por %p1732_p10, %p1731_p7 }
  0x46   : > { %p1734_p12 = pnand %p1733_p8, %p1727_p4 }
  0x48   : > { %1737 = shalt.err (!%p1734_p12)
}
  0x49   : > { %s2486_s7 = smov 8   ;;  %s2487_s30 = smov 128  }
  0x4a   : > { %1578 = dma.hbm_to_vmem [thread:$0]  (!%p2022_p13), %s295_s22, 1024, %s297_s2, %s284_s18, %s2487_s30, %s2487_s30, %s2486_s7  }
  0x4b   : > { %s310_s20 = scalar_lea.vmem [#allocation4], %s2011_s24  ;;  %s306_s15 = sand.u32 1, %s1844_s8  }
  0x4c   : > { %s319_s21 = sshll.u32 %s310_s20, 4  ;;  %s307_s23 = scalar_lea.sflag [#allocation5], %s306_s15  ;;  %s320_s21 = int_to_ptr.vmem [resolvable:$true] %s319_s21 }
  0x4d   : > { %s1751_s14 = scalar_lea.vmem %s320_s21, 1024  ;;  %s1851_s12 = smov [#allocation4]  }
  0x4e   : > { %p1752_p2 = scmp.ne.s32.totalorder %s320_s21, %s1751_s14  ;;  %s1756_s16 = sshll.u32 %s1851_s12, 4  ;;  %s1757_s16 = int_to_ptr.vmem [resolvable:$false] %s1756_s16 }
  0x4f   : > { %s1758_s13 = scalar_lea.vmem %s1757_s16, 2048  ;;  %p1759_p4 = scmp.lt.s32.totalorder %s320_s21, %s1757_s16 }
  0x50   : > { %p1754_p3 = pnand %p1752_p2, %p1712_p0  ;;  %p1760_p7 = scmp.lt.s32.totalorder %s1758_s13, %s1751_s14 }
  0x52   : > { %p1755_p9 = pneg %p1754_p3  ;;  %p1761_p10 = por %p1760_p7, %p1759_p4 }
  0x54   : > { %p1762_p8 = pnand %p1761_p10, %p1755_p9 }
  0x56   : > { %1765 = shalt.err (!%p1762_p8)
}
  0x57   : > { %1581 = dma.hbm_to_vmem [thread:$0]  (!%p2022_p13), %s2032_s19, 1024, %s320_s21, %s307_s23, %s2487_s30, %s2487_s30, %s2486_s7  }
  0x58   : > { %331 = sbr.rel (%p1947_p6) target bundleno = 561 (0x231), region = 44  ;;  %s2058_s2 = sand.u32 (!%p1947_p6), 1, %s1820_s25  }
  0x59   : > { %s1402_s24 = sshll.u32 (!%p1947_p6), %s2058_s2, 6  ;;  %s334_s22 = scalar_lea.sflag (!%p1947_p6), [#allocation3], %s2058_s2 }
  0x5a   : > { %s2062_s18 = scalar_lea.vmem (!%p1947_p6), [#allocation2], %s1402_s24 }
  0x5d   : > { %1799 = dma.done.wait (%p1943_p5), %s334_s22, 1024  }
  0x5e   : > { %1801 = vsyncadd (%p1943_p5), %s334_s22, 4294966272  ;;  %s342_s6 = sand.u32 1, %s1934_s9   ;;  %s2069_s19 = scalar_lea.vmem [#allocation4], %s1402_s24 }
  0x5f   : > { %s343_s11 = scalar_lea.sflag [#allocation5], %s342_s6 }
  0x60   : > { %1803 = dma.done.wait (%p1943_p5), %s343_s11, 1024  }
  0x61   : > { %1805 = vsyncadd (%p1943_p5), %s343_s11, 4294966272 }
  0x62   : > { %1807 = dma.done.wait (%p60_p1), [#allocation5], 2048  }
  0x63   : > { %1809 = vsyncadd (%p60_p1), [#allocation5], 4294965248 }
  0x64   : > { %1811 = dma.done.wait (%p60_p1), [#allocation8], 2048  }
  0x65   : > { %1813 = vsyncadd (%p60_p1), [#allocation8], 4294965248  ;;  %v428_v0 = vld [vmem:[#allocation6 + $0x78] sm:$0xff]  ;;  %v427_v1 = vld [vmem:[#allocation6 + $0x70] sm:$0xff]  ;;  %s1406_s9 = sshll.u32 %s2058_s2, 8  ;;  %vm829_vm0 = vcmask 261120  }
  0x66   : > { %1468 = vmatprep.subr.mxu0 %v428_v0  ;;  %v556_v2 = vld [vmem:[#allocation7 + $0x78] sm:$0xff]  ;;  %v426_v3 = vld [vmem:[#allocation6 + $0x68] sm:$0xff]  ;;  %v555_v4 = vld [vmem:[#allocation7 + $0x70] sm:$0xff]  ;;  %s2106_s21 = scalar_lea.vmem [#allocation9], %s1406_s9  ;;  %s1852_s15 = smov 64  }
  0x67   : > { %1469 = vmatpush3.msra.mxu0 %v428_v0  ;;  %1512 = vmatprep.subr.mxu1 %v556_v2  ;;  %v554_v5 = vld [vmem:[#allocation7 + $0x68] sm:$0xff]  ;;  %v425_v6 = vld [vmem:[#allocation6 + $0x60] sm:$0xff]  ;;  %v424_v8 = vld [vmem:[#allocation6 + $0x58] sm:$0xff]  ;;  %s1853_s23 = smov 96   ;;  %s2114_s14 = scalar_lea.vmem [#allocation10], %s1406_s9 }
  0x68   : > { %1470 = vmatprep.subr.mxu0 %v427_v1  ;;  %1513 = vmatpush3.msra.mxu1 %v556_v2  ;;  %v553_v7 = vld [vmem:[#allocation7 + $0x60] sm:$0xff]  ;;  %v552_v9 = vld [vmem:[#allocation7 + $0x58] sm:$0xff]  ;;  %v423_v10 = vld [vmem:[#allocation6 + $0x50] sm:$0xff]  ;;  %s1854_s12 = smov 32   ;;  %s1412_s16 = sshll.u32 (%p1996_p11), %s1828_s27, 3 }
  0x69   : > { %1471 = vmatpush3.msra.mxu0 %v427_v1  ;;  %1514 = vmatprep.subr.mxu1 %v555_v4  ;;  %v551_v11 = vld [vmem:[#allocation7 + $0x50] sm:$0xff]  ;;  %v422_v12 = vld [vmem:[#allocation6 + $0x48] sm:$0xff]  ;;  %v421_v14 = vld [vmem:[#allocation6 + $0x40] sm:$0xff]  ;;  %s1413_s13 = sshll.u32 (%p1996_p11), %s1832_s28, 7  ;;  %s2488_s6 = sld [smem:[#allocation20_spill]] (%p1996_p11) }
  0x6a   : > { %1472 = vmatprep.subr.mxu0 %v426_v3  ;;  %1515 = vmatpush3.msra.mxu1 %v555_v4  ;;  %v550_v13 = vld [vmem:[#allocation7 + $0x48] sm:$0xff]  ;;  %v549_v15 = vld [vmem:[#allocation7 + $0x40] sm:$0xff]  ;;  %v420_v16 = vld [vmem:[#allocation6 + $0x38] sm:$0xff]  ;;  %s907_s2 = sadd.s32 (%p1996_p11), %s1413_s13, %s1412_s16 }
  0x6b   : > { %1473 = vmatpush3.msra.mxu0 %v426_v3  ;;  %1516 = vmatprep.subr.mxu1 %v554_v5  ;;  %v548_v17 = vld [vmem:[#allocation7 + $0x38] sm:$0xff]  ;;  %v419_v18 = vld [vmem:[#allocation6 + $0x30] sm:$0xff]  ;;  %v418_v20 = vld [vmem:[#allocation6 + $0x28] sm:$0xff]  ;;  %s1414_s24 = sshll.u32 (%p1996_p11), %s907_s2, 3 }
  0x6c   : > { %1474 = vmatprep.subr.mxu0 %v425_v6  ;;  %1517 = vmatpush3.msra.mxu1 %v554_v5  ;;  %v547_v19 = vld [vmem:[#allocation7 + $0x30] sm:$0xff]  ;;  %v546_v21 = vld [vmem:[#allocation7 + $0x28] sm:$0xff]  ;;  %v417_v22 = vld [vmem:[#allocation6 + $0x20] sm:$0xff] }
  0x6d   : > { %1475 = vmatpush3.msra.mxu0 %v425_v6  ;;  %1518 = vmatprep.subr.mxu1 %v553_v7  ;;  %v545_v23 = vld [vmem:[#allocation7 + $0x20] sm:$0xff]  ;;  %v416_v24 = vld [vmem:[#allocation6 + $0x18] sm:$0xff]  ;;  %v415_v26 = vld [vmem:[#allocation6 + $0x10] sm:$0xff] }
  0x6e   : > { %1476 = vmatprep.subr.mxu0 %v424_v8  ;;  %1519 = vmatpush3.msra.mxu1 %v553_v7  ;;  %v544_v25 = vld [vmem:[#allocation7 + $0x18] sm:$0xff]  ;;  %v397_v27 = vld [vmem:[%s2062_s18] sm:$0xff]  ;;  %v414_v28 = vld [vmem:[#allocation6 + $0x8] sm:$0xff] }
  0x6f   : > { %1477 = vmatpush3.msra.mxu0 %v424_v8  ;;  %1520 = vmatprep.subr.mxu1 %v552_v9  ;;  %v543_v29 = vld [vmem:[#allocation7 + $0x10] sm:$0xff]  ;;  %v413_v30 = vld [vmem:[#allocation6] sm:$0xff]  ;;  %v542_v31 = vld [vmem:[#allocation7 + $0x8] sm:$0xff]  ;;  %s2302_s11 = scalar_lea.vmem (%p1996_p11), %s2488_s6, %s1414_s24 }
  0x70   : > { %1478 = vmatprep.subr.mxu0 %v423_v10  ;;  %1521 = vmatpush3.msra.mxu1 %v552_v9  ;;  %v398_v32 = vld [vmem:[%s2062_s18 + $0x8] sm:$0xff]  ;;  %v541_v33 = vld [vmem:[#allocation7] sm:$0xff]  ;;  %v399_v36 = vld [vmem:[%s2062_s18 + $0x10] sm:$0xff] }
  0x71   : > { %1479 = vmatpush3.msra.mxu0 %v423_v10  ;;  %1522 = vmatprep.subr.mxu1 %v551_v11  ;;  %v405_v34 = vld [vmem:[%s2069_s19] sm:$0xff]  ;;  %v406_v35 = vld [vmem:[%s2069_s19 + $0x8] sm:$0xff]  ;;  %v407_v37 = vld [vmem:[%s2069_s19 + $0x10] sm:$0xff] }
  0x72   : > { %1480 = vmatprep.subr.mxu0 %v422_v12  ;;  %1523 = vmatpush3.msra.mxu1 %v551_v11  ;;  %v400_v38 = vld [vmem:[%s2062_s18 + $0x18] sm:$0xff]  ;;  %v401_v39 = vld [vmem:[%s2062_s18 + $0x20] sm:$0xff]  ;;  %v402_v42 = vld [vmem:[%s2062_s18 + $0x28] sm:$0xff] }
  0x73   : > { %1481 = vmatpush3.msra.mxu0 %v422_v12  ;;  %1524 = vmatprep.subr.mxu1 %v550_v13  ;;  %v408_v40 = vld [vmem:[%s2069_s19 + $0x18] sm:$0xff]  ;;  %v409_v41 = vld [vmem:[%s2069_s19 + $0x20] sm:$0xff]  ;;  %v403_v43 = vld [vmem:[%s2062_s18 + $0x30] sm:$0xff] }
  0x74   : > { %1482 = vmatprep.subr.mxu0 %v421_v14  ;;  %1525 = vmatpush3.msra.mxu1 %v550_v13  ;;  %v410_v44 = vld [vmem:[%s2069_s19 + $0x28] sm:$0xff]  ;;  %v411_v45 = vld [vmem:[%s2069_s19 + $0x30] sm:$0xff]  ;;  %v404_v46 = vld [vmem:[%s2062_s18 + $0x38] sm:$0xff] }
  0x75   : > { %1483 = vmatpush3.msra.mxu0 %v421_v14  ;;  %1526 = vmatprep.subr.mxu1 %v549_v15  ;;  %v412_v47 = vld [vmem:[%s2069_s19 + $0x38] sm:$0xff]  ;;  %v1408_v48 = vld [vmem:[%s2459_s3] ss:$0 sm:$0xff] }
  0x76   : > { %1484 = vmatprep.subr.mxu0 %v420_v16  ;;  %1527 = vmatpush3.msra.mxu1 %v549_v15  ;;  %v1409_v50 = vld [vmem:[%s2461_s5] ss:$0 sm:$0xff] }
  0x77   : > { %1485 = vmatpush3.msra.mxu0 %v420_v16  ;;  %1528 = vmatprep.subr.mxu1 %v548_v17 }
  0x78   : > { %1486 = vmatprep.subr.mxu0 %v419_v18  ;;  %1529 = vmatpush3.msra.mxu1 %v548_v17 }
  0x79   : > { %1487 = vmatpush3.msra.mxu0 %v419_v18  ;;  %1530 = vmatprep.subr.mxu1 %v547_v19 }
  0x7a   : > { %1488 = vmatprep.subr.mxu0 %v418_v20  ;;  %1531 = vmatpush3.msra.mxu1 %v547_v19 }
  0x7b   : > { %1489 = vmatpush3.msra.mxu0 %v418_v20  ;;  %1532 = vmatprep.subr.mxu1 %v546_v21 }
  0x7c   : > { %1490 = vmatprep.subr.mxu0 %v417_v22  ;;  %1533 = vmatpush3.msra.mxu1 %v546_v21 }
  0x7d   : > { %1491 = vmatpush3.msra.mxu0 %v417_v22  ;;  %1534 = vmatprep.subr.mxu1 %v545_v23 }
  0x7e   : > { %1492 = vmatprep.subr.mxu0 %v416_v24  ;;  %1535 = vmatpush3.msra.mxu1 %v545_v23 }
  0x7f   : > { %1493 = vmatpush3.msra.mxu0 %v416_v24  ;;  %1536 = vmatprep.subr.mxu1 %v544_v25 }
  0x80   : > { %1494 = vmatprep.subr.mxu0 %v415_v26  ;;  %1500 = vmatprep.mubr.f32.mxu0 %v397_v27 }
  0x81   : > { %1495 = vmatpush3.msra.mxu0 %v415_v26  ;;  %1537 = vmatpush3.msra.mxu1 %v544_v25 }
  0x82   : > { %1496 = vmatprep.subr.mxu0 %v414_v28  ;;  %1538 = vmatprep.subr.mxu1 %v543_v29 }
  0x83   : > { %1497 = vmatpush3.msra.mxu0 %v414_v28  ;;  %1539 = vmatpush3.msra.mxu1 %v543_v29 }
  0x84   : > { %1498 = vmatprep.subr.mxu0 %v413_v30  ;;  %1540 = vmatprep.subr.mxu1 %v542_v31 }
  0x85   : > { %1499 = vmatpush3.msra.mxu0 %v413_v30  ;;  %1541 = vmatpush3.msra.mxu1 %v542_v31 }
  0x86   : > { %1501 = vmatmul.mubr.f32.vlgmr.msra.gmra.mxu0 %v398_v32  ;;  %1542 = vmatprep.subr.mxu1 %v541_v33 }
  0x87   : > { %1543 = vmatpush3.msra.mxu1 %v541_v33  ;;  %1544 = vmatprep.mubr.f32.mxu1 %v405_v34 }
  0x88   : > { %1545 = vmatmul.mubr.f32.vlgmr.msra.gmra.mxu1 %v406_v35  ;;  %1503 = vmatprep.mubr.f32.mxu0 %v399_v36 }
  0x89   : > { %1547 = vmatprep.mubr.f32.mxu1 %v407_v37 }
  0x8a   : > { %1504 = vmatmul.mubr.f32.gmra.mxu0 %v400_v38 }
  0x8b   : > { %1506 = vmatprep.mubr.f32.mxu0 %v401_v39 }
  0x8c   : > { %1548 = vmatmul.mubr.f32.gmra.mxu1 %v408_v40 }
  0x8d   : > { %1550 = vmatprep.mubr.f32.mxu1 %v409_v41 }
  0x8e   : > { %1507 = vmatmul.mubr.f32.gmra.mxu0 %v402_v42 }
  0x8f   : > { %1509 = vmatprep.mubr.f32.mxu0 %v403_v43 }
  0x90   : > { %1551 = vmatmul.mubr.f32.gmra.mxu1 %v410_v44 }
  0x91   : > { %1553 = vmatprep.mubr.f32.mxu1 %v411_v45 }
  0x92   : > { %1510 = vmatmul.mubr.f32.gmra.mxu0 %v404_v46 }
  0x94   : > { %1554 = vmatmul.mubr.f32.gmra.mxu1 %v412_v47 }
 0x146   : > { %v1502_v49 = vpop.f32.mrf.mxu0 }
 0x147   : > { %v508_v51 = vadd.f32 %v1502_v49, %v1408_v48 }
 0x148   : > { %v502_v52 = vpop.f32.mrf.mxu0  ;;  %v1546_v53 = vpop.f32.mrf.mxu1 }
 0x149   : > { %831 = vst.msk [vmem:[%s2106_s21 + $0x8] sm:$0xff] %vm829_vm0, %v508_v51  ;;  %v503_v54 = vadd.f32 %v1408_v48, %v502_v52  ;;  %703 = vrot.lane.b32.xlu1 %v508_v51, %s1852_s15  ;;  %679 = vrot.lane.b32.xlu0 %v508_v51, %s1853_s23  ;;  %v636_v55 = vadd.f32 %v1546_v53, %v1409_v50 }
 0x14a   : > { %v630_v56 = vpop.f32.mrf.mxu1  ;;  %v1505_v57 = vpop.f32.mrf.mxu0 }
 0x14b   : > { %830 = vst.msk [vmem:[%s2106_s21] sm:$0xff] %vm829_vm0, %v503_v54  ;;  %863 = vst.msk [vmem:[%s2114_s14 + $0x8] sm:$0xff] %vm829_vm0, %v636_v55  ;;  %v631_v58 = vadd.f32 %v1409_v50, %v630_v56  ;;  %v518_v59 = vadd.f32 %v1505_v57, %v1408_v48 }
 0x14c   : > { %v512_v60 = vpop.f32.mrf.mxu0  ;;  %v1549_v61 = vpop.f32.mrf.mxu1 }
 0x14d   : > { %727 = vrot.lane.b32.xlu1 %v508_v51, %s1854_s12  ;;  %677 = vrot.lane.b32.xlu0 %v503_v54, %s1853_s23  ;;  %862 = vst.msk [vmem:[%s2114_s14] sm:$0xff] %vm829_vm0, %v631_v58  ;;  %833 = vst.msk [vmem:[%s2106_s21 + $0x18] sm:$0xff] %vm829_vm0, %v518_v59  ;;  %v513_v62 = vadd.f32 %v1408_v48, %v512_v60  ;;  %v646_v63 = vadd.f32 %v1549_v61, %v1409_v50 }
 0x14e   : > { %v640_v0 = vpop.f32.mrf.mxu1  ;;  %v1508_v1 = vpop.f32.mrf.mxu0 }
 0x14f   : > { %832 = vst.msk [vmem:[%s2106_s21 + $0x10] sm:$0xff] %vm829_vm0, %v513_v62  ;;  %865 = vst.msk [vmem:[%s2114_s14 + $0x18] sm:$0xff] %vm829_vm0, %v646_v63  ;;  %v641_v2 = vadd.f32 %v1409_v50, %v640_v0  ;;  %v528_v3 = vadd.f32 %v1508_v1, %v1408_v48 }
 0x150   : > { %v522_v4 = vpop.f32.mrf.mxu0  ;;  %v1552_v5 = vpop.f32.mrf.mxu1 }
 0x151   : > { %759 = vrot.lane.b32.xlu1 %v636_v55, %s1853_s23  ;;  %701 = vrot.lane.b32.xlu0 %v503_v54, %s1852_s15  ;;  %864 = vst.msk [vmem:[%s2114_s14 + $0x10] sm:$0xff] %vm829_vm0, %v641_v2  ;;  %835 = vst.msk [vmem:[%s2106_s21 + $0x28] sm:$0xff] %vm829_vm0, %v528_v3  ;;  %v523_v6 = vadd.f32 %v1408_v48, %v522_v4  ;;  %v656_v7 = vadd.f32 %v1552_v5, %v1409_v50 }
 0x152   : > { %v650_v8 = vpop.f32.mrf.mxu1  ;;  %v1511_v9 = vpop.f32.mrf.mxu0 }
 0x153   : > { %834 = vst.msk [vmem:[%s2106_s21 + $0x20] sm:$0xff] %vm829_vm0, %v523_v6  ;;  %867 = vst.msk [vmem:[%s2114_s14 + $0x28] sm:$0xff] %vm829_vm0, %v656_v7  ;;  %v651_v10 = vadd.f32 %v1409_v50, %v650_v8  ;;  %v538_v11 = vadd.f32 %v1511_v9, %v1408_v48 }
 0x154   : > { %v532_v12 = vpop.f32.mrf.mxu0  ;;  %v1555_v13 = vpop.f32.mrf.mxu1  ;;  %v1006_v5 = vld [vmem:[%s2106_s21 + $0x18] sm:$0xff] (%p1996_p11) }
 0x155   : > { %783 = vrot.lane.b32.xlu1 %v636_v55, %s1852_s15  ;;  %725 = vrot.lane.b32.xlu0 %v503_v54, %s1854_s12  ;;  %866 = vst.msk [vmem:[%s2114_s14 + $0x20] sm:$0xff] %vm829_vm0, %v651_v10  ;;  %837 = vst.msk [vmem:[%s2106_s21 + $0x38] sm:$0xff] %vm829_vm0, %v538_v11  ;;  %v533_v14 = vadd.f32 %v1408_v48, %v532_v12  ;;  %v666_v15 = vadd.f32 %v1555_v13, %v1409_v50 }
 0x156   : > { %v660_v16 = vpop.f32.mrf.mxu1  ;;  %v1004_v4 = vld [vmem:[%s2106_s21 + $0x10] sm:$0xff] (%p1996_p11)  ;;  %1007 = vst [vmem:[%s2302_s11 + $0x18] sm:$0xff] (%p1996_p11), %v1006_v5 }
 0x157   : > { %836 = vst.msk [vmem:[%s2106_s21 + $0x30] sm:$0xff] %vm829_vm0, %v533_v14  ;;  %869 = vst.msk [vmem:[%s2114_s14 + $0x38] sm:$0xff] %vm829_vm0, %v666_v15  ;;  %v661_v17 = vadd.f32 %v1409_v50, %v660_v16 }
 0x158   : > { %1005 = vst [vmem:[%s2302_s11 + $0x10] sm:$0xff] (%p1996_p11), %v1004_v4 }
 0x159   : > { %807 = vrot.lane.b32.xlu1 %v636_v55, %s1854_s12  ;;  %757 = vrot.lane.b32.xlu0 %v631_v58, %s1853_s23  ;;  %868 = vst.msk [vmem:[%s2114_s14 + $0x30] sm:$0xff] %vm829_vm0, %v661_v17 }
 0x15c   : > { %v1014_v9 = vld [vmem:[%s2106_s21 + $0x38] sm:$0xff] (%p1996_p11) }
 0x15d   : > { %683 = vrot.lane.b32.xlu1 %v518_v59, %s1853_s23  ;;  %781 = vrot.lane.b32.xlu0 %v631_v58, %s1852_s15  ;;  %1015 = vst [vmem:[%s2302_s11 + $0x38] sm:$0xff] (%p1996_p11), %v1014_v9 }
 0x15e   : > { %v1012_v8 = vld [vmem:[%s2106_s21 + $0x30] sm:$0xff] (%p1996_p11) }
 0x15f   : > { %1013 = vst [vmem:[%s2302_s11 + $0x30] sm:$0xff] (%p1996_p11), %v1012_v8 }
 0x161   : > { %707 = vrot.lane.b32.xlu1 %v518_v59, %s1852_s15  ;;  %805 = vrot.lane.b32.xlu0 %v631_v58, %s1854_s12 }
 0x165   : > { %731 = vrot.lane.b32.xlu1 %v518_v59, %s1854_s12  ;;  %705 = vrot.lane.b32.xlu0 %v513_v62, %s1852_s15 }
 0x169   : > { %763 = vrot.lane.b32.xlu1 %v646_v63, %s1853_s23  ;;  %729 = vrot.lane.b32.xlu0 %v513_v62, %s1854_s12 }
 0x16d   : > { %787 = vrot.lane.b32.xlu1 %v646_v63, %s1852_s15  ;;  %761 = vrot.lane.b32.xlu0 %v641_v2, %s1853_s23 }
 0x171   : > { %811 = vrot.lane.b32.xlu1 %v646_v63, %s1854_s12  ;;  %785 = vrot.lane.b32.xlu0 %v641_v2, %s1852_s15 }
 0x175   : > { %681 = vrot.lane.b32.xlu1 %v513_v62, %s1853_s23  ;;  %809 = vrot.lane.b32.xlu0 %v641_v2, %s1854_s12  ;;  %v1000_v2 = vld [vmem:[%s2106_s21] sm:$0xff] (%p1996_p11) }
 0x176   : > { %1001 = vst [vmem:[%s2302_s11] sm:$0xff] (%p1996_p11), %v1000_v2 }
 0x179   : > { %687 = vrot.lane.b32.xlu1 %v528_v3, %s1853_s23  ;;  %685 = vrot.lane.b32.xlu0 %v523_v6, %s1853_s23 }
 0x17d   : > { %711 = vrot.lane.b32.xlu1 %v528_v3, %s1852_s15  ;;  %709 = vrot.lane.b32.xlu0 %v523_v6, %s1852_s15 }
 0x181   : > { %735 = vrot.lane.b32.xlu1 %v528_v3, %s1854_s12  ;;  %733 = vrot.lane.b32.xlu0 %v523_v6, %s1854_s12  ;;  %v1002_v3 = vld [vmem:[%s2106_s21 + $0x8] sm:$0xff] (%p1996_p11)  ;;  %v1008_v6 = vld [vmem:[%s2106_s21 + $0x20] sm:$0xff] (%p1996_p11) }
 0x182   : > { %1003 = vst [vmem:[%s2302_s11 + $0x8] sm:$0xff] (%p1996_p11), %v1002_v3  ;;  %1009 = vst [vmem:[%s2302_s11 + $0x20] sm:$0xff] (%p1996_p11), %v1008_v6 }
 0x185   : > { %767 = vrot.lane.b32.xlu1 %v656_v7, %s1853_s23  ;;  %765 = vrot.lane.b32.xlu0 %v651_v10, %s1853_s23 }
 0x189   : > { %791 = vrot.lane.b32.xlu1 %v656_v7, %s1852_s15  ;;  %789 = vrot.lane.b32.xlu0 %v651_v10, %s1852_s15 }
 0x18d   : > { %815 = vrot.lane.b32.xlu1 %v656_v7, %s1854_s12  ;;  %813 = vrot.lane.b32.xlu0 %v651_v10, %s1854_s12  ;;  %v1010_v7 = vld [vmem:[%s2106_s21 + $0x28] sm:$0xff] (%p1996_p11) }
 0x18e   : > { %1011 = vst [vmem:[%s2302_s11 + $0x28] sm:$0xff] (%p1996_p11), %v1010_v7 }
 0x191   : > { %691 = vrot.lane.b32.xlu1 %v538_v11, %s1853_s23  ;;  %689 = vrot.lane.b32.xlu0 %v533_v14, %s1853_s23 }
 0x195   : > { %715 = vrot.lane.b32.xlu1 %v538_v11, %s1852_s15  ;;  %713 = vrot.lane.b32.xlu0 %v533_v14, %s1852_s15 }
 0x199   : > { %739 = vrot.lane.b32.xlu1 %v538_v11, %s1854_s12  ;;  %737 = vrot.lane.b32.xlu0 %v533_v14, %s1854_s12 }
 0x19d   : > { %771 = vrot.lane.b32.xlu1 %v666_v15, %s1853_s23  ;;  %769 = vrot.lane.b32.xlu0 %v661_v17, %s1853_s23 }
 0x1a1   : > { %795 = vrot.lane.b32.xlu1 %v666_v15, %s1852_s15  ;;  %793 = vrot.lane.b32.xlu0 %v661_v17, %s1852_s15 }
 0x1a5   : > { %819 = vrot.lane.b32.xlu1 %v666_v15, %s1854_s12  ;;  %817 = vrot.lane.b32.xlu0 %v661_v17, %s1854_s12 }
 0x1bb   : > { %v704_v18 = vpop.permute.xlu1 %703  ;;  %v680_v19 = vpop.permute.xlu0 %679 }
 0x1bc   : > { %847 = vst.msk [vmem:[%s2106_s21 + $0x88] sm:$0xff] %vm829_vm0, %v704_v18  ;;  %839 = vst.msk [vmem:[%s2106_s21 + $0x48] sm:$0xff] %vm829_vm0, %v680_v19 }
 0x1bf   : > { %v728_v20 = vpop.permute.xlu1 %727  ;;  %v678_v21 = vpop.permute.xlu0 %677 }
 0x1c0   : > { %855 = vst.msk [vmem:[%s2106_s21 + $0xc8] sm:$0xff] %vm829_vm0, %v728_v20  ;;  %838 = vst.msk [vmem:[%s2106_s21 + $0x40] sm:$0xff] %vm829_vm0, %v678_v21 }
 0x1c3   : > { %v760_v22 = vpop.permute.xlu1 %759  ;;  %v702_v23 = vpop.permute.xlu0 %701  ;;  %v1018_v11 = vld [vmem:[%s2106_s21 + $0x48] sm:$0xff] (%p1996_p11) }
 0x1c4   : > { %871 = vst.msk [vmem:[%s2114_s14 + $0x48] sm:$0xff] %vm829_vm0, %v760_v22  ;;  %846 = vst.msk [vmem:[%s2106_s21 + $0x80] sm:$0xff] %vm829_vm0, %v702_v23  ;;  %v1034_v19 = vld [vmem:[%s2106_s21 + $0x88] sm:$0xff] (%p1996_p11) }
 0x1c5   : > { %1019 = vst [vmem:[%s2302_s11 + $0x108] sm:$0xff] (%p1996_p11), %v1018_v11  ;;  %1035 = vst [vmem:[%s2302_s11 + $0x208] sm:$0xff] (%p1996_p11), %v1034_v19 }
 0x1c7   : > { %v784_v24 = vpop.permute.xlu1 %783  ;;  %v726_v25 = vpop.permute.xlu0 %725  ;;  %v1016_v10 = vld [vmem:[%s2106_s21 + $0x40] sm:$0xff] (%p1996_p11) }
 0x1c8   : > { %879 = vst.msk [vmem:[%s2114_s14 + $0x88] sm:$0xff] %vm829_vm0, %v784_v24  ;;  %854 = vst.msk [vmem:[%s2106_s21 + $0xc0] sm:$0xff] %vm829_vm0, %v726_v25 }
 0x1c9   : > { %1017 = vst [vmem:[%s2302_s11 + $0x100] sm:$0xff] (%p1996_p11), %v1016_v10 }
 0x1cb   : > { %v808_v26 = vpop.permute.xlu1 %807  ;;  %v758_v27 = vpop.permute.xlu0 %757  ;;  %v1032_v18 = vld [vmem:[%s2106_s21 + $0x80] sm:$0xff] (%p1996_p11) }
 0x1cc   : > { %887 = vst.msk [vmem:[%s2114_s14 + $0xc8] sm:$0xff] %vm829_vm0, %v808_v26  ;;  %870 = vst.msk [vmem:[%s2114_s14 + $0x40] sm:$0xff] %vm829_vm0, %v758_v27  ;;  %v1050_v27 = vld [vmem:[%s2106_s21 + $0xc8] sm:$0xff] (%p1996_p11) }
 0x1cd   : > { %1033 = vst [vmem:[%s2302_s11 + $0x200] sm:$0xff] (%p1996_p11), %v1032_v18  ;;  %1051 = vst [vmem:[%s2302_s11 + $0x308] sm:$0xff] (%p1996_p11), %v1050_v27 }
 0x1cf   : > { %v684_v28 = vpop.permute.xlu1 %683  ;;  %v782_v29 = vpop.permute.xlu0 %781  ;;  %v1048_v26 = vld [vmem:[%s2106_s21 + $0xc0] sm:$0xff] (%p1996_p11) }
 0x1d0   : > { %841 = vst.msk [vmem:[%s2106_s21 + $0x58] sm:$0xff] %vm829_vm0, %v684_v28  ;;  %878 = vst.msk [vmem:[%s2114_s14 + $0x80] sm:$0xff] %vm829_vm0, %v782_v29 }
 0x1d1   : > { %1049 = vst [vmem:[%s2302_s11 + $0x300] sm:$0xff] (%p1996_p11), %v1048_v26 }
 0x1d3   : > { %v708_v30 = vpop.permute.xlu1 %707  ;;  %v806_v31 = vpop.permute.xlu0 %805 }
 0x1d4   : > { %849 = vst.msk [vmem:[%s2106_s21 + $0x98] sm:$0xff] %vm829_vm0, %v708_v30  ;;  %886 = vst.msk [vmem:[%s2114_s14 + $0xc0] sm:$0xff] %vm829_vm0, %v806_v31 }
 0x1d7   : > { %v732_v32 = vpop.permute.xlu1 %731  ;;  %v706_v33 = vpop.permute.xlu0 %705  ;;  %v1022_v13 = vld [vmem:[%s2106_s21 + $0x58] sm:$0xff] (%p1996_p11) }
 0x1d8   : > { %857 = vst.msk [vmem:[%s2106_s21 + $0xd8] sm:$0xff] %vm829_vm0, %v732_v32  ;;  %848 = vst.msk [vmem:[%s2106_s21 + $0x90] sm:$0xff] %vm829_vm0, %v706_v33 }
 0x1d9   : > { %1023 = vst [vmem:[%s2302_s11 + $0x118] sm:$0xff] (%p1996_p11), %v1022_v13 }
 0x1db   : > { %v764_v34 = vpop.permute.xlu1 %763  ;;  %v730_v35 = vpop.permute.xlu0 %729  ;;  %v1038_v21 = vld [vmem:[%s2106_s21 + $0x98] sm:$0xff] (%p1996_p11) }
 0x1dc   : > { %873 = vst.msk [vmem:[%s2114_s14 + $0x58] sm:$0xff] %vm829_vm0, %v764_v34  ;;  %856 = vst.msk [vmem:[%s2106_s21 + $0xd0] sm:$0xff] %vm829_vm0, %v730_v35 }
 0x1dd   : > { %1039 = vst [vmem:[%s2302_s11 + $0x218] sm:$0xff] (%p1996_p11), %v1038_v21 }
 0x1df   : > { %v788_v36 = vpop.permute.xlu1 %787  ;;  %v762_v37 = vpop.permute.xlu0 %761  ;;  %v1036_v20 = vld [vmem:[%s2106_s21 + $0x90] sm:$0xff] (%p1996_p11)  ;;  %v1054_v29 = vld [vmem:[%s2106_s21 + $0xd8] sm:$0xff] (%p1996_p11) }
 0x1e0   : > { %881 = vst.msk [vmem:[%s2114_s14 + $0x98] sm:$0xff] %vm829_vm0, %v788_v36  ;;  %872 = vst.msk [vmem:[%s2114_s14 + $0x50] sm:$0xff] %vm829_vm0, %v762_v37 }
 0x1e1   : > { %1037 = vst [vmem:[%s2302_s11 + $0x210] sm:$0xff] (%p1996_p11), %v1036_v20  ;;  %1055 = vst [vmem:[%s2302_s11 + $0x318] sm:$0xff] (%p1996_p11), %v1054_v29 }
 0x1e3   : > { %v812_v38 = vpop.permute.xlu1 %811  ;;  %v786_v39 = vpop.permute.xlu0 %785  ;;  %v1052_v28 = vld [vmem:[%s2106_s21 + $0xd0] sm:$0xff] (%p1996_p11) }
 0x1e4   : > { %889 = vst.msk [vmem:[%s2114_s14 + $0xd8] sm:$0xff] %vm829_vm0, %v812_v38  ;;  %880 = vst.msk [vmem:[%s2114_s14 + $0x90] sm:$0xff] %vm829_vm0, %v786_v39 }
 0x1e5   : > { %1053 = vst [vmem:[%s2302_s11 + $0x310] sm:$0xff] (%p1996_p11), %v1052_v28 }
 0x1e7   : > { %v682_v40 = vpop.permute.xlu1 %681  ;;  %v810_v41 = vpop.permute.xlu0 %809 }
 0x1e8   : > { %840 = vst.msk [vmem:[%s2106_s21 + $0x50] sm:$0xff] %vm829_vm0, %v682_v40  ;;  %888 = vst.msk [vmem:[%s2114_s14 + $0xd0] sm:$0xff] %vm829_vm0, %v810_v41 }
 0x1eb   : > { %v688_v42 = vpop.permute.xlu1 %687  ;;  %v686_v43 = vpop.permute.xlu0 %685 }
 0x1ec   : > { %843 = vst.msk [vmem:[%s2106_s21 + $0x68] sm:$0xff] %vm829_vm0, %v688_v42  ;;  %842 = vst.msk [vmem:[%s2106_s21 + $0x60] sm:$0xff] %vm829_vm0, %v686_v43 }
 0x1ef   : > { %v712_v44 = vpop.permute.xlu1 %711  ;;  %v710_v45 = vpop.permute.xlu0 %709  ;;  %v1020_v12 = vld [vmem:[%s2106_s21 + $0x50] sm:$0xff] (%p1996_p11) }
 0x1f0   : > { %851 = vst.msk [vmem:[%s2106_s21 + $0xa8] sm:$0xff] %vm829_vm0, %v712_v44  ;;  %850 = vst.msk [vmem:[%s2106_s21 + $0xa0] sm:$0xff] %vm829_vm0, %v710_v45 }
 0x1f1   : > { %1021 = vst [vmem:[%s2302_s11 + $0x110] sm:$0xff] (%p1996_p11), %v1020_v12 }
 0x1f3   : > { %v736_v46 = vpop.permute.xlu1 %735  ;;  %v734_v47 = vpop.permute.xlu0 %733  ;;  %v1024_v14 = vld [vmem:[%s2106_s21 + $0x60] sm:$0xff] (%p1996_p11)  ;;  %v1026_v15 = vld [vmem:[%s2106_s21 + $0x68] sm:$0xff] (%p1996_p11) }
 0x1f4   : > { %859 = vst.msk [vmem:[%s2106_s21 + $0xe8] sm:$0xff] %vm829_vm0, %v736_v46  ;;  %858 = vst.msk [vmem:[%s2106_s21 + $0xe0] sm:$0xff] %vm829_vm0, %v734_v47 }
 0x1f5   : > { %1025 = vst [vmem:[%s2302_s11 + $0x120] sm:$0xff] (%p1996_p11), %v1024_v14  ;;  %1027 = vst [vmem:[%s2302_s11 + $0x128] sm:$0xff] (%p1996_p11), %v1026_v15 }
 0x1f7   : > { %v768_v48 = vpop.permute.xlu1 %767  ;;  %v766_v49 = vpop.permute.xlu0 %765  ;;  %v1040_v22 = vld [vmem:[%s2106_s21 + $0xa0] sm:$0xff] (%p1996_p11)  ;;  %v1042_v23 = vld [vmem:[%s2106_s21 + $0xa8] sm:$0xff] (%p1996_p11) }
 0x1f8   : > { %875 = vst.msk [vmem:[%s2114_s14 + $0x68] sm:$0xff] %vm829_vm0, %v768_v48  ;;  %874 = vst.msk [vmem:[%s2114_s14 + $0x60] sm:$0xff] %vm829_vm0, %v766_v49 }
 0x1f9   : > { %1041 = vst [vmem:[%s2302_s11 + $0x220] sm:$0xff] (%p1996_p11), %v1040_v22  ;;  %1043 = vst [vmem:[%s2302_s11 + $0x228] sm:$0xff] (%p1996_p11), %v1042_v23 }
 0x1fb   : > { %v792_v50 = vpop.permute.xlu1 %791  ;;  %v790_v51 = vpop.permute.xlu0 %789  ;;  %v1056_v30 = vld [vmem:[%s2106_s21 + $0xe0] sm:$0xff] (%p1996_p11)  ;;  %v1058_v31 = vld [vmem:[%s2106_s21 + $0xe8] sm:$0xff] (%p1996_p11) }
 0x1fc   : > { %883 = vst.msk [vmem:[%s2114_s14 + $0xa8] sm:$0xff] %vm829_vm0, %v792_v50  ;;  %882 = vst.msk [vmem:[%s2114_s14 + $0xa0] sm:$0xff] %vm829_vm0, %v790_v51 }
 0x1fd   : > { %1057 = vst [vmem:[%s2302_s11 + $0x320] sm:$0xff] (%p1996_p11), %v1056_v30  ;;  %1059 = vst [vmem:[%s2302_s11 + $0x328] sm:$0xff] (%p1996_p11), %v1058_v31 }
 0x1ff   : > { %v816_v52 = vpop.permute.xlu1 %815  ;;  %v814_v53 = vpop.permute.xlu0 %813 }
 0x200   : > { %891 = vst.msk [vmem:[%s2114_s14 + $0xe8] sm:$0xff] %vm829_vm0, %v816_v52  ;;  %890 = vst.msk [vmem:[%s2114_s14 + $0xe0] sm:$0xff] %vm829_vm0, %v814_v53 }
 0x203   : > { %v692_v54 = vpop.permute.xlu1 %691  ;;  %v690_v55 = vpop.permute.xlu0 %689 }
 0x204   : > { %845 = vst.msk [vmem:[%s2106_s21 + $0x78] sm:$0xff] %vm829_vm0, %v692_v54  ;;  %844 = vst.msk [vmem:[%s2106_s21 + $0x70] sm:$0xff] %vm829_vm0, %v690_v55 }
 0x207   : > { %v716_v56 = vpop.permute.xlu1 %715  ;;  %v714_v57 = vpop.permute.xlu0 %713 }
 0x208   : > { %853 = vst.msk [vmem:[%s2106_s21 + $0xb8] sm:$0xff] %vm829_vm0, %v716_v56  ;;  %852 = vst.msk [vmem:[%s2106_s21 + $0xb0] sm:$0xff] %vm829_vm0, %v714_v57 }
 0x20b   : > { %v740_v58 = vpop.permute.xlu1 %739  ;;  %v738_v59 = vpop.permute.xlu0 %737  ;;  %v1028_v16 = vld [vmem:[%s2106_s21 + $0x70] sm:$0xff] (%p1996_p11)  ;;  %v1030_v17 = vld [vmem:[%s2106_s21 + $0x78] sm:$0xff] (%p1996_p11) }
 0x20c   : > { %861 = vst.msk [vmem:[%s2106_s21 + $0xf8] sm:$0xff] %vm829_vm0, %v740_v58  ;;  %860 = vst.msk [vmem:[%s2106_s21 + $0xf0] sm:$0xff] %vm829_vm0, %v738_v59 }
 0x20d   : > { %1029 = vst [vmem:[%s2302_s11 + $0x130] sm:$0xff] (%p1996_p11), %v1028_v16  ;;  %1031 = vst [vmem:[%s2302_s11 + $0x138] sm:$0xff] (%p1996_p11), %v1030_v17 }
 0x20f   : > { %v772_v60 = vpop.permute.xlu1 %771  ;;  %v770_v61 = vpop.permute.xlu0 %769  ;;  %v1044_v24 = vld [vmem:[%s2106_s21 + $0xb0] sm:$0xff] (%p1996_p11)  ;;  %v1046_v25 = vld [vmem:[%s2106_s21 + $0xb8] sm:$0xff] (%p1996_p11) }
 0x210   : > { %877 = vst.msk [vmem:[%s2114_s14 + $0x78] sm:$0xff] %vm829_vm0, %v772_v60  ;;  %876 = vst.msk [vmem:[%s2114_s14 + $0x70] sm:$0xff] %vm829_vm0, %v770_v61 }
 0x211   : > { %1045 = vst [vmem:[%s2302_s11 + $0x230] sm:$0xff] (%p1996_p11), %v1044_v24  ;;  %1047 = vst [vmem:[%s2302_s11 + $0x238] sm:$0xff] (%p1996_p11), %v1046_v25 }
 0x213   : > { %v796_v62 = vpop.permute.xlu1 %795  ;;  %v794_v63 = vpop.permute.xlu0 %793  ;;  %v1060_v32 = vld [vmem:[%s2106_s21 + $0xf0] sm:$0xff] (%p1996_p11)  ;;  %v1062_v33 = vld [vmem:[%s2106_s21 + $0xf8] sm:$0xff] (%p1996_p11) }
 0x214   : > { %885 = vst.msk [vmem:[%s2114_s14 + $0xb8] sm:$0xff] %vm829_vm0, %v796_v62  ;;  %884 = vst.msk [vmem:[%s2114_s14 + $0xb0] sm:$0xff] %vm829_vm0, %v794_v63  ;;  %904 = sbr.rel (!%p1996_p11) target bundleno = 537 (0x219), region = 64 }
 0x215   : > { %1061 = vst [vmem:[%s2302_s11 + $0x330] sm:$0xff] (%p1996_p11), %v1060_v32  ;;  %1063 = vst [vmem:[%s2302_s11 + $0x338] sm:$0xff] (%p1996_p11), %v1062_v33 }
 0x217   : > { %v820_v0 = vpop.permute.xlu1 %819  ;;  %v818_v1 = vpop.permute.xlu0 %817 }
 0x218   : > { %893 = vst.msk [vmem:[%s2114_s14 + $0xf8] sm:$0xff] %vm829_vm0, %v820_v0  ;;  %892 = vst.msk [vmem:[%s2114_s14 + $0xf0] sm:$0xff] %vm829_vm0, %v818_v1 }
 0x219 PF: > { %1069 = sbr.rel (!%p1996_p11) target bundleno = 561 (0x231), region = 102  ;;  %s1415_s19 = sshll.u32 (%p1996_p11), %s1828_s27, 3  ;;  %v1165_v34 = vld [vmem:[%s2114_s14] sm:$0xff] (%p1996_p11)  ;;  %v1167_v35 = vld [vmem:[%s2114_s14 + $0x8] sm:$0xff] (%p1996_p11)  ;;  %v1169_v36 = vld [vmem:[%s2114_s14 + $0x10] sm:$0xff] (%p1996_p11) }
 0x21a   : > { %s1416_s9 = sshll.u32 (%p1996_p11), %s1832_s28, 7  ;;  %v1171_v37 = vld [vmem:[%s2114_s14 + $0x18] sm:$0xff] (%p1996_p11)  ;;  %v1173_v38 = vld [vmem:[%s2114_s14 + $0x20] sm:$0xff] (%p1996_p11)  ;;  %v1175_v39 = vld [vmem:[%s2114_s14 + $0x28] sm:$0xff] (%p1996_p11)  ;;  %s2489_s20 = sld [smem:[#allocation21_spill]] (%p1996_p11) }
 0x21b   : > { %s1072_s17 = sadd.s32 (%p1996_p11), %s1416_s9, %s1415_s19  ;;  %v1177_v40 = vld [vmem:[%s2114_s14 + $0x30] sm:$0xff] (%p1996_p11)  ;;  %v1179_v41 = vld [vmem:[%s2114_s14 + $0x38] sm:$0xff] (%p1996_p11)  ;;  %v1181_v42 = vld [vmem:[%s2114_s14 + $0x40] sm:$0xff] (%p1996_p11) }
 0x21c   : > { %s1417_s10 = sshll.u32 (%p1996_p11), %s1072_s17, 3  ;;  %v1183_v43 = vld [vmem:[%s2114_s14 + $0x48] sm:$0xff] (%p1996_p11)  ;;  %v1185_v44 = vld [vmem:[%s2114_s14 + $0x50] sm:$0xff] (%p1996_p11)  ;;  %v1187_v45 = vld [vmem:[%s2114_s14 + $0x58] sm:$0xff] (%p1996_p11) }
 0x21d   : > { %v1189_v46 = vld [vmem:[%s2114_s14 + $0x60] sm:$0xff] (%p1996_p11)  ;;  %v1191_v47 = vld [vmem:[%s2114_s14 + $0x68] sm:$0xff] (%p1996_p11)  ;;  %v1193_v48 = vld [vmem:[%s2114_s14 + $0x70] sm:$0xff] (%p1996_p11) }
 0x21e   : > { %v1195_v49 = vld [vmem:[%s2114_s14 + $0x78] sm:$0xff]  ;;  %v1197_v50 = vld [vmem:[%s2114_s14 + $0x80] sm:$0xff]  ;;  %v1199_v51 = vld [vmem:[%s2114_s14 + $0x88] sm:$0xff] }
 0x21f   : > { %v1201_v52 = vld [vmem:[%s2114_s14 + $0x90] sm:$0xff]  ;;  %v1203_v53 = vld [vmem:[%s2114_s14 + $0x98] sm:$0xff]  ;;  %v1205_v54 = vld [vmem:[%s2114_s14 + $0xa0] sm:$0xff] }
 0x220   : > { %s2375_s21 = scalar_lea.vmem %s2489_s20, %s1417_s10  ;;  %v1207_v55 = vld [vmem:[%s2114_s14 + $0xa8] sm:$0xff]  ;;  %v1209_v56 = vld [vmem:[%s2114_s14 + $0xb0] sm:$0xff]  ;;  %v1211_v57 = vld [vmem:[%s2114_s14 + $0xb8] sm:$0xff] }
 0x221   : > { %1166 = vst [vmem:[%s2375_s21] sm:$0xff] %v1165_v34  ;;  %1168 = vst [vmem:[%s2375_s21 + $0x8] sm:$0xff] %v1167_v35  ;;  %v1213_v58 = vld [vmem:[%s2114_s14 + $0xc0] sm:$0xff]  ;;  %v1215_v59 = vld [vmem:[%s2114_s14 + $0xc8] sm:$0xff] }
 0x222   : > { %1170 = vst [vmem:[%s2375_s21 + $0x10] sm:$0xff] %v1169_v36  ;;  %1172 = vst [vmem:[%s2375_s21 + $0x18] sm:$0xff] %v1171_v37  ;;  %v1217_v60 = vld [vmem:[%s2114_s14 + $0xd0] sm:$0xff]  ;;  %v1219_v61 = vld [vmem:[%s2114_s14 + $0xd8] sm:$0xff] }
 0x223   : > { %1174 = vst [vmem:[%s2375_s21 + $0x20] sm:$0xff] %v1173_v38  ;;  %1176 = vst [vmem:[%s2375_s21 + $0x28] sm:$0xff] %v1175_v39  ;;  %v1221_v62 = vld [vmem:[%s2114_s14 + $0xe0] sm:$0xff]  ;;  %v1223_v63 = vld [vmem:[%s2114_s14 + $0xe8] sm:$0xff] }
 0x224   : > { %1178 = vst [vmem:[%s2375_s21 + $0x30] sm:$0xff] %v1177_v40  ;;  %1180 = vst [vmem:[%s2375_s21 + $0x38] sm:$0xff] %v1179_v41  ;;  %v1225_v0 = vld [vmem:[%s2114_s14 + $0xf0] sm:$0xff]  ;;  %v1227_v1 = vld [vmem:[%s2114_s14 + $0xf8] sm:$0xff] }
 0x225   : > { %1182 = vst [vmem:[%s2375_s21 + $0x100] sm:$0xff] %v1181_v42  ;;  %1184 = vst [vmem:[%s2375_s21 + $0x108] sm:$0xff] %v1183_v43 }
 0x226   : > { %1186 = vst [vmem:[%s2375_s21 + $0x110] sm:$0xff] %v1185_v44  ;;  %1188 = vst [vmem:[%s2375_s21 + $0x118] sm:$0xff] %v1187_v45 }
 0x227   : > { %1190 = vst [vmem:[%s2375_s21 + $0x120] sm:$0xff] %v1189_v46  ;;  %1192 = vst [vmem:[%s2375_s21 + $0x128] sm:$0xff] %v1191_v47 }
 0x228   : > { %1194 = vst [vmem:[%s2375_s21 + $0x130] sm:$0xff] %v1193_v48  ;;  %1196 = vst [vmem:[%s2375_s21 + $0x138] sm:$0xff] %v1195_v49 }
 0x229   : > { %1198 = vst [vmem:[%s2375_s21 + $0x200] sm:$0xff] %v1197_v50  ;;  %1200 = vst [vmem:[%s2375_s21 + $0x208] sm:$0xff] %v1199_v51 }
 0x22a   : > { %1202 = vst [vmem:[%s2375_s21 + $0x210] sm:$0xff] %v1201_v52  ;;  %1204 = vst [vmem:[%s2375_s21 + $0x218] sm:$0xff] %v1203_v53 }
 0x22b   : > { %1206 = vst [vmem:[%s2375_s21 + $0x220] sm:$0xff] %v1205_v54  ;;  %1208 = vst [vmem:[%s2375_s21 + $0x228] sm:$0xff] %v1207_v55 }
 0x22c   : > { %1210 = vst [vmem:[%s2375_s21 + $0x230] sm:$0xff] %v1209_v56  ;;  %1212 = vst [vmem:[%s2375_s21 + $0x238] sm:$0xff] %v1211_v57 }
 0x22d   : > { %1214 = vst [vmem:[%s2375_s21 + $0x300] sm:$0xff] %v1213_v58  ;;  %1216 = vst [vmem:[%s2375_s21 + $0x308] sm:$0xff] %v1215_v59 }
 0x22e   : > { %1218 = vst [vmem:[%s2375_s21 + $0x310] sm:$0xff] %v1217_v60  ;;  %1220 = vst [vmem:[%s2375_s21 + $0x318] sm:$0xff] %v1219_v61 }
 0x22f   : > { %1222 = vst [vmem:[%s2375_s21 + $0x320] sm:$0xff] %v1221_v62  ;;  %1224 = vst [vmem:[%s2375_s21 + $0x328] sm:$0xff] %v1223_v63 }
 0x230   : > { %1226 = vst [vmem:[%s2375_s21 + $0x330] sm:$0xff] %v1225_v0  ;;  %1228 = vst [vmem:[%s2375_s21 + $0x338] sm:$0xff] %v1227_v1 }
 0x231 PF: > { %s25_s8 = sadd.s32 1, %s1844_s8   ;;  %s2490_s28 = sld [smem:[#allocation15_spill]] }
 0x232   : > { %p22_p1 = scmp.ge.s32.totalorder %s25_s8, 10   ;;  %s2491_s15 = sld [smem:[#allocation16_spill]] }
 0x233   : > { %s2492_s30 = sld [smem:[#allocation17_spill]]  ;;  %s2493_s24 = smov %s1820_s25 }
 0x234   : > { %s2494_s25 = smov %s1824_s26  ;;  %s2495_s26 = smov %s2016_s4 }
 0x235   : > { %s2496_s27 = smov %s1836_s29  ;;  %24 = sbr.rel (!%p22_p1) target bundleno = 13 (0xd), region = 193 }
 0x238   : > { %s2497_s29 = smov %s2491_s15 }
 0x23a   :  { %1251 = vsyncpa [#allocation3], 1 }
 0x23b   :  { %1253 = vsyncpa [#allocation3 + $0x1], 1 }
 0x23c   :  { %1254 = vsyncpa [#allocation5], 1 }
 0x23d   :  { %1256 = vsyncpa [#allocation5 + $0x1], 1 }
 0x23e   :  { %1257 = vsyncpa [#allocation8], 1 }

// kernel: tpu_custom_call.1
= control target key start
LH: loop header
LB: loop body
LE: loop exit
PB: predicated region body
PF: predicated region fallthrough
CT: control target
= control target key end

     0   :  { %s2456_s0 = inlined_call_operand.hbm [shape: f32[2,256,128], index: 0, kind: input, shape index: {}]   ;;  %s2457_s1 = inlined_call_operand.hbm [shape: f32[2,256,128], index: 1, kind: input, shape index: {}]   ;;  %s2458_s2 = inlined_call_operand.hbm [shape: f32[128,128], index: 2, kind: input, shape index: {}]   ;;  %s2459_s3 = inlined_call_operand.vmem [shape: f32[1,128], index: 3, kind: input, shape index: {}]   ;;  %s2460_s4 = inlined_call_operand.hbm [shape: f32[128,128], index: 4, kind: input, shape index: {}]   ;;  %s2461_s5 = inlined_call_operand.vmem [shape: f32[1,128], index: 5, kind: input, shape index: {}]   ;;  %s2462_s6 = inlined_call_operand.vmem [shape: f32[2,4,256,32], index: 6, kind: output, shape index: {0}]   ;;  %s2463_s7 = inlined_call_operand.vmem [shape: f32[2,4,256,32], index: 7, kind: output, shape index: {1}]  }
   0x1   :  { %2471 = sst [smem:[#allocation18_spill]] %s2458_s2 }
   0x2   :  { %2472 = sst [smem:[#allocation19_spill]] %s2460_s4 }
   0x3   :  { %2473 = sst [smem:[#allocation20_spill]] %s2462_s6 }
   0x4   :  { %2474 = sst [smem:[#allocation21_spill]] %s2463_s7 }
   0x5   :  { %13 = vsyncpa [#allocation3], 0 }
   0x6   :  { %15 = vsyncpa [#allocation3 + $0x1], 0 }
   0x7   :  { %16 = vsyncpa [#allocation5], 0 }
   0x8   :  { %18 = vsyncpa [#allocation5 + $0x1], 0 }
   0x9   :  { %19 = vsyncpa [#allocation8], 0  ;;  %s1895_s24 = smov 0   ;;  %s1897_s25 = smov 0  }
   0xa   :  { %s1899_s26 = smov 0   ;;  %s1901_s27 = smov 0  }
   0xb   :  { %s1903_s28 = smov 0   ;;  %s1905_s29 = smov 0  }
   0xc   :  { %s1907_s30 = smov 0   ;;  %s1909_s8 = smov 0  }
   0xd LB: > { %2475 = sst [smem:[#allocation15_spill]] %s1840_s30  ;;  %s1934_s9 = sadd.s32 4294967295, %s1844_s8   ;;  %s1844_s8 = sphi %s1909_s8, %s25_s8   ;;  %s1840_s30 = sphi %s1907_s30, %s2492_s30   ;;  %s1836_s29 = sphi %s1905_s29, %s2497_s29   ;;  %s1832_s28 = sphi %s1903_s28, %s2490_s28   ;;  %s1828_s27 = sphi %s1901_s27, %s2496_s27   ;;  %s1824_s26 = sphi %s1899_s26, %s2495_s26   ;;  %s1820_s25 = sphi %s1897_s25, %s2494_s25   ;;  %s1816_s24 = sphi %s1895_s24, %s2493_s24  }
   0xe   : > { %p59_p0 = scmp.ne.s32.totalorder %s1820_s25, %s1816_s24  ;;  %p60_p1 = scmp.eq.s32.totalorder %s1934_s9, 0 }
   0xf   : > { %p197_p2 = scmp.eq.s32.totalorder %s1934_s9, 7  ;;  %p1389_p3 = scmp.ge.s32.totalorder %s1844_s8, 1 }
  0x10   : > { %p238_p4 = scmp.lt.s32.totalorder %s1844_s8, 9  ;;  %p1943_p5 = por %p60_p1, %p59_p0 }
  0x11   : > { %s1846_s12 = smov [#allocation6]   ;;  %s1847_s15 = smov [#allocation7]  }
  0x12   : > { %p1947_p6 = pnand %p1389_p3, %p238_p4  ;;  %s250_s13 = sshll.u32 %s1846_s12, 4  ;;  %s251_s13 = int_to_ptr.vmem [resolvable:$true] %s250_s13 }
  0x13   : > { %s266_s16 = sshll.u32 %s1847_s15, 4  ;;  %s1669_s17 = scalar_lea.vmem %s251_s13, 2048  ;;  %s267_s16 = int_to_ptr.vmem [resolvable:$true] %s266_s16 }
  0x14   : > { %p1568_p7 = pneg %p1947_p6  ;;  %p1670_p10 = scmp.ne.s32.totalorder %s251_s13, %s1669_s17 }
  0x15   : > { %p1677_p13 = scmp.lt.s32.totalorder %s251_s13, %s251_s13  ;;  %p1678_p0 = scmp.lt.s32.totalorder %s1669_s17, %s1669_s17 }
  0x16   : > { %p1955_p8 = pnand %p1568_p7, %p60_p1 }
  0x17   : > { %p1679_p3 = por %p1678_p0, %p1677_p13 }
  0x18   : > { %p1660_p9 = pneg %p1955_p8 }
  0x1a   : > { %p1672_p11 = pnand %p1670_p10, %p1660_p9 }
  0x1c   : > { %p1673_p12 = pneg %p1672_p11 }
  0x1e   : > { %p1680_p4 = pnand %p1679_p3, %p1673_p12 }
  0x20   : > { %1683 = shalt.err (!%p1680_p4)
}
  0x21   : > { %s2464_s18 = smov 128   ;;  %s2466_s19 = smov 8  }
  0x22   : > { %s2479_s2 = sld [smem:[#allocation18_spill]]  ;;  %s1695_s22 = scalar_lea.vmem %s267_s16, 2048 }
  0x23   : > { %p1696_p7 = scmp.ne.s32.totalorder %s267_s16, %s1695_s22  ;;  %p1703_p12 = scmp.lt.s32.totalorder %s267_s16, %s267_s16 }
  0x24   : > { %p1704_p13 = scmp.lt.s32.totalorder %s1695_s22, %s1695_s22 }
  0x25   : > { %p1698_p10 = pnand %p1696_p7, %p1660_p9 }
  0x26   : > { %p1705_p0 = por %p1704_p13, %p1703_p12 }
  0x27   : > { %p1699_p11 = pneg %p1698_p10 }
  0x28   : > { %1571 = dma.hbm_to_vmem [thread:$0]  (!%p1955_p8), %s2479_s2, 2048, %s251_s13, [#allocation5], %s2464_s18, %s2464_s18, %s2466_s19  }
  0x29   : > { %p1706_p3 = pnand %p1705_p0, %p1699_p11 }
  0x2b   : > { %1709 = shalt.err (!%p1706_p3)
}
  0x2c   : > { %s2480_s4 = sld [smem:[#allocation19_spill]]  ;;  %s34_s12 = sadd.s32 1, %s1836_s29 }
  0x2d   : > { %p35_p9 = scmp.ge.s32.totalorder %s34_s12, 4  ;;  %s37_s13 = sadd.s32 1, %s1840_s30 }
  0x2e   : > { %s46_s14 = sadd.s32 1, %s1824_s26  ;;  %p53_p4 = scmp.ne.s32.totalorder %s1824_s26, %s1820_s25 }
  0x2f   : > { %s2499_s12 = smov (%p35_p9, %s34_s12), 0  ;;  %s2501_s13 = smov (!%p35_p9, %s37_s13), %s1840_s30 }
  0x30   : > { %2481 = sst [smem:[#allocation16_spill]] %s2499_s12  ;;  %s42_s15 = ssub.s32 %s1836_s29, %s2499_s12 }
  0x31   : > { %p54_p7 = scmp.eq.s32.totalorder %s1844_s8, 0  ;;  %p39_p10 = scmp.ge.s32.totalorder %s2501_s13, 2 }
  0x32   : > { %1574 = dma.hbm_to_vmem [thread:$0]  (!%p1955_p8), %s2480_s4, 2048, %s267_s16, [#allocation8], %s2464_s18, %s2464_s18, %s2466_s19  }
  0x33   : > { %p1996_p11 = por %p197_p2, %p53_p4  ;;  %p2000_p8 = por %p54_p7, %p53_p4 }
  0x34   : > { %p1584_p12 = scmp.lt.s32.totalorder %s1844_s8, 8  ;;  %s2503_s13 = smov (%p39_p10, %s2501_s13), 0 }
  0x35   : > { %2484 = sst [smem:[#allocation17_spill]] %s2503_s13  ;;  %s283_s20 = sand.u32 1, %s1824_s26  }
  0x36   : > { %s1394_s21 = sshll.u32 %s1836_s29, 3  ;;  %s41_s22 = ssub.s32 %s1840_s30, %s2503_s13 }
  0x37   : > { %s43_s23 = sor.u32 %s42_s15, %s41_s22  ;;  %s2011_s24 = sshll.u32 %s283_s20, 6 }
  0x38   : > { %p44_p2 = scmp.eq.s32.totalorder %s43_s23, 0  ;;  %s1395_s18 = sshll.u32 %s1840_s30, 5 }
  0x39   : > { %s287_s19 = scalar_lea.vmem [#allocation2], %s2011_s24  ;;  %s293_s12 = sadd.s32 %s1395_s18, %s1394_s21 }
  0x3a   : > { %s296_s2 = sshll.u32 %s287_s19, 4  ;;  %s1396_s7 = sshll.u32 %s293_s12, 7  ;;  %s297_s2 = int_to_ptr.vmem [resolvable:$true] %s296_s2 }
  0x3b   : > { %s2016_s4 = scalar_select %p44_p2, %s1824_s26, %s46_s14  }
  0x3c   : > { %p2022_p13 = pnand %p1584_p12, %p2000_p8  ;;  %s295_s22 = scalar_lea.hbm %s2456_s0, %s1396_s7 }
  0x3d   : > { %s2032_s19 = scalar_lea.hbm %s2457_s1, %s1396_s7  ;;  %s284_s18 = scalar_lea.sflag [#allocation3], %s283_s20 }
  0x3e   : > { %p1712_p0 = pneg %p2022_p13  ;;  %s1723_s12 = scalar_lea.vmem %s297_s2, 1024 }
  0x3f   : > { %p1724_p3 = scmp.ne.s32.totalorder %s297_s2, %s1723_s12  ;;  %s1850_s14 = smov [#allocation2]  }
  0x40   : > { %s1728_s16 = sshll.u32 %s1850_s14, 4  ;;  %s1729_s16 = int_to_ptr.vmem [resolvable:$false] %s1728_s16 }
  0x41   : > { %p1726_p9 = pnand %p1724_p3, %p1712_p0  ;;  %s1730_s13 = scalar_lea.vmem %s1729_s16, 2048 }
  0x42   : > { %p1731_p7 = scmp.lt.s32.totalorder %s297_s2, %s1729_s16  ;;  %p1732_p10 = scmp.lt.s32.totalorder %s1730_s13, %s1723_s12 }
  0x43   : > { %p1727_p4 = pneg %p1726_p9 }
  0x44   : > { %p1733_p8 = por %p1732_p10, %p1731_p7 }
  0x46   : > { %p1734_p12 = pnand %p1733_p8, %p1727_p4 }
  0x48   : > { %1737 = shalt.err (!%p1734_p12)
}
  0x49   : > { %s2486_s7 = smov 8   ;;  %s2487_s30 = smov 128  }
  0x4a   : > { %1578 = dma.hbm_to_vmem [thread:$0]  (!%p2022_p13), %s295_s22, 1024, %s297_s2, %s284_s18, %s2487_s30, %s2487_s30, %s2486_s7  }
  0x4b   : > { %s310_s20 = scalar_lea.vmem [#allocation4], %s2011_s24  ;;  %s306_s15 = sand.u32 1, %s1844_s8  }
  0x4c   : > { %s319_s21 = sshll.u32 %s310_s20, 4  ;;  %s307_s23 = scalar_lea.sflag [#allocation5], %s306_s15  ;;  %s320_s21 = int_to_ptr.vmem [resolvable:$true] %s319_s21 }
  0x4d   : > { %s1751_s14 = scalar_lea.vmem %s320_s21, 1024  ;;  %s1851_s12 = smov [#allocation4]  }
  0x4e   : > { %p1752_p2 = scmp.ne.s32.totalorder %s320_s21, %s1751_s14  ;;  %s1756_s16 = sshll.u32 %s1851_s12, 4  ;;  %s1757_s16 = int_to_ptr.vmem [resolvable:$false] %s1756_s16 }
  0x4f   : > { %s1758_s13 = scalar_lea.vmem %s1757_s16, 2048  ;;  %p1759_p4 = scmp.lt.s32.totalorder %s320_s21, %s1757_s16 }
  0x50   : > { %p1754_p3 = pnand %p1752_p2, %p1712_p0  ;;  %p1760_p7 = scmp.lt.s32.totalorder %s1758_s13, %s1751_s14 }
  0x52   : > { %p1755_p9 = pneg %p1754_p3  ;;  %p1761_p10 = por %p1760_p7, %p1759_p4 }
  0x54   : > { %p1762_p8 = pnand %p1761_p10, %p1755_p9 }
  0x56   : > { %1765 = shalt.err (!%p1762_p8)
}
  0x57   : > { %1581 = dma.hbm_to_vmem [thread:$0]  (!%p2022_p13), %s2032_s19, 1024, %s320_s21, %s307_s23, %s2487_s30, %s2487_s30, %s2486_s7  }
  0x58   : > { %331 = sbr.rel (%p1947_p6) target bundleno = 561 (0x231), region = 44  ;;  %s2058_s2 = sand.u32 (!%p1947_p6), 1, %s1820_s25  }
  0x59   : > { %s1402_s24 = sshll.u32 (!%p1947_p6), %s2058_s2, 6  ;;  %s334_s22 = scalar_lea.sflag (!%p1947_p6), [#allocation3], %s2058_s2 }
  0x5a   : > { %s2062_s18 = scalar_lea.vmem (!%p1947_p6), [#allocation2], %s1402_s24 }
  0x5d   : > { %1799 = dma.done.wait (%p1943_p5), %s334_s22, 1024  }
  0x5e   : > { %1801 = vsyncadd (%p1943_p5), %s334_s22, 4294966272  ;;  %s342_s6 = sand.u32 1, %s1934_s9   ;;  %s2069_s19 = scalar_lea.vmem [#allocation4], %s1402_s24 }
  0x5f   : > { %s343_s11 = scalar_lea.sflag [#allocation5], %s342_s6 }
  0x60   : > { %1803 = dma.done.wait (%p1943_p5), %s343_s11, 1024  }
  0x61   : > { %1805 = vsyncadd (%p1943_p5), %s343_s11, 4294966272 }
  0x62   : > { %1807 = dma.done.wait (%p60_p1), [#allocation5], 2048  }
  0x63   : > { %1809 = vsyncadd (%p60_p1), [#allocation5], 4294965248 }
  0x64   : > { %1811 = dma.done.wait (%p60_p1), [#allocation8], 2048  }
  0x65   : > { %1813 = vsyncadd (%p60_p1), [#allocation8], 4294965248  ;;  %v428_v0 = vld [vmem:[#allocation6 + $0x78] sm:$0xff]  ;;  %v427_v1 = vld [vmem:[#allocation6 + $0x70] sm:$0xff]  ;;  %s1406_s9 = sshll.u32 %s2058_s2, 8  ;;  %vm829_vm0 = vcmask 261120  }
  0x66   : > { %1468 = vmatprep.subr.mxu0 %v428_v0  ;;  %v556_v2 = vld [vmem:[#allocation7 + $0x78] sm:$0xff]  ;;  %v426_v3 = vld [vmem:[#allocation6 + $0x68] sm:$0xff]  ;;  %v555_v4 = vld [vmem:[#allocation7 + $0x70] sm:$0xff]  ;;  %s2106_s21 = scalar_lea.vmem [#allocation9], %s1406_s9  ;;  %s1852_s15 = smov 64  }
  0x67   : > { %1469 = vmatpush3.msra.mxu0 %v428_v0  ;;  %1512 = vmatprep.subr.mxu1 %v556_v2  ;;  %v554_v5 = vld [vmem:[#allocation7 + $0x68] sm:$0xff]  ;;  %v425_v6 = vld [vmem:[#allocation6 + $0x60] sm:$0xff]  ;;  %v424_v8 = vld [vmem:[#allocation6 + $0x58] sm:$0xff]  ;;  %s1853_s23 = smov 96   ;;  %s2114_s14 = scalar_lea.vmem [#allocation10], %s1406_s9 }
  0x68   : > { %1470 = vmatprep.subr.mxu0 %v427_v1  ;;  %1513 = vmatpush3.msra.mxu1 %v556_v2  ;;  %v553_v7 = vld [vmem:[#allocation7 + $0x60] sm:$0xff]  ;;  %v552_v9 = vld [vmem:[#allocation7 + $0x58] sm:$0xff]  ;;  %v423_v10 = vld [vmem:[#allocation6 + $0x50] sm:$0xff]  ;;  %s1854_s12 = smov 32   ;;  %s1412_s16 = sshll.u32 (%p1996_p11), %s1828_s27, 3 }
  0x69   : > { %1471 = vmatpush3.msra.mxu0 %v427_v1  ;;  %1514 = vmatprep.subr.mxu1 %v555_v4  ;;  %v551_v11 = vld [vmem:[#allocation7 + $0x50] sm:$0xff]  ;;  %v422_v12 = vld [vmem:[#allocation6 + $0x48] sm:$0xff]  ;;  %v421_v14 = vld [vmem:[#allocation6 + $0x40] sm:$0xff]  ;;  %s1413_s13 = sshll.u32 (%p1996_p11), %s1832_s28, 7  ;;  %s2488_s6 = sld [smem:[#allocation20_spill]] (%p1996_p11) }
  0x6a   : > { %1472 = vmatprep.subr.mxu0 %v426_v3  ;;  %1515 = vmatpush3.msra.mxu1 %v555_v4  ;;  %v550_v13 = vld [vmem:[#allocation7 + $0x48] sm:$0xff]  ;;  %v549_v15 = vld [vmem:[#allocation7 + $0x40] sm:$0xff]  ;;  %v420_v16 = vld [vmem:[#allocation6 + $0x38] sm:$0xff]  ;;  %s907_s2 = sadd.s32 (%p1996_p11), %s1413_s13, %s1412_s16 }
  0x6b   : > { %1473 = vmatpush3.msra.mxu0 %v426_v3  ;;  %1516 = vmatprep.subr.mxu1 %v554_v5  ;;  %v548_v17 = vld [vmem:[#allocation7 + $0x38] sm:$0xff]  ;;  %v419_v18 = vld [vmem:[#allocation6 + $0x30] sm:$0xff]  ;;  %v418_v20 = vld [vmem:[#allocation6 + $0x28] sm:$0xff]  ;;  %s1414_s24 = sshll.u32 (%p1996_p11), %s907_s2, 3 }
  0x6c   : > { %1474 = vmatprep.subr.mxu0 %v425_v6  ;;  %1517 = vmatpush3.msra.mxu1 %v554_v5  ;;  %v547_v19 = vld [vmem:[#allocation7 + $0x30] sm:$0xff]  ;;  %v546_v21 = vld [vmem:[#allocation7 + $0x28] sm:$0xff]  ;;  %v417_v22 = vld [vmem:[#allocation6 + $0x20] sm:$0xff] }
  0x6d   : > { %1475 = vmatpush3.msra.mxu0 %v425_v6  ;;  %1518 = vmatprep.subr.mxu1 %v553_v7  ;;  %v545_v23 = vld [vmem:[#allocation7 + $0x20] sm:$0xff]  ;;  %v416_v24 = vld [vmem:[#allocation6 + $0x18] sm:$0xff]  ;;  %v415_v26 = vld [vmem:[#allocation6 + $0x10] sm:$0xff] }
  0x6e   : > { %1476 = vmatprep.subr.mxu0 %v424_v8  ;;  %1519 = vmatpush3.msra.mxu1 %v553_v7  ;;  %v544_v25 = vld [vmem:[#allocation7 + $0x18] sm:$0xff]  ;;  %v397_v27 = vld [vmem:[%s2062_s18] sm:$0xff]  ;;  %v414_v28 = vld [vmem:[#allocation6 + $0x8] sm:$0xff] }
  0x6f   : > { %1477 = vmatpush3.msra.mxu0 %v424_v8  ;;  %1520 = vmatprep.subr.mxu1 %v552_v9  ;;  %v543_v29 = vld [vmem:[#allocation7 + $0x10] sm:$0xff]  ;;  %v413_v30 = vld [vmem:[#allocation6] sm:$0xff]  ;;  %v542_v31 = vld [vmem:[#allocation7 + $0x8] sm:$0xff]  ;;  %s2302_s11 = scalar_lea.vmem (%p1996_p11), %s2488_s6, %s1414_s24 }
  0x70   : > { %1478 = vmatprep.subr.mxu0 %v423_v10  ;;  %1521 = vmatpush3.msra.mxu1 %v552_v9  ;;  %v398_v32 = vld [vmem:[%s2062_s18 + $0x8] sm:$0xff]  ;;  %v541_v33 = vld [vmem:[#allocation7] sm:$0xff]  ;;  %v399_v36 = vld [vmem:[%s2062_s18 + $0x10] sm:$0xff] }
  0x71   : > { %1479 = vmatpush3.msra.mxu0 %v423_v10  ;;  %1522 = vmatprep.subr.mxu1 %v551_v11  ;;  %v405_v34 = vld [vmem:[%s2069_s19] sm:$0xff]  ;;  %v406_v35 = vld [vmem:[%s2069_s19 + $0x8] sm:$0xff]  ;;  %v407_v37 = vld [vmem:[%s2069_s19 + $0x10] sm:$0xff] }
  0x72   : > { %1480 = vmatprep.subr.mxu0 %v422_v12  ;;  %1523 = vmatpush3.msra.mxu1 %v551_v11  ;;  %v400_v38 = vld [vmem:[%s2062_s18 + $0x18] sm:$0xff]  ;;  %v401_v39 = vld [vmem:[%s2062_s18 + $0x20] sm:$0xff]  ;;  %v402_v42 = vld [vmem:[%s2062_s18 + $0x28] sm:$0xff] }
  0x73   : > { %1481 = vmatpush3.msra.mxu0 %v422_v12  ;;  %1524 = vmatprep.subr.mxu1 %v550_v13  ;;  %v408_v40 = vld [vmem:[%s2069_s19 + $0x18] sm:$0xff]  ;;  %v409_v41 = vld [vmem:[%s2069_s19 + $0x20] sm:$0xff]  ;;  %v403_v43 = vld [vmem:[%s2062_s18 + $0x30] sm:$0xff] }
  0x74   : > { %1482 = vmatprep.subr.mxu0 %v421_v14  ;;  %1525 = vmatpush3.msra.mxu1 %v550_v13  ;;  %v410_v44 = vld [vmem:[%s2069_s19 + $0x28] sm:$0xff]  ;;  %v411_v45 = vld [vmem:[%s2069_s19 + $0x30] sm:$0xff]  ;;  %v404_v46 = vld [vmem:[%s2062_s18 + $0x38] sm:$0xff] }
  0x75   : > { %1483 = vmatpush3.msra.mxu0 %v421_v14  ;;  %1526 = vmatprep.subr.mxu1 %v549_v15  ;;  %v412_v47 = vld [vmem:[%s2069_s19 + $0x38] sm:$0xff]  ;;  %v1408_v48 = vld [vmem:[%s2459_s3] ss:$0 sm:$0xff] }
  0x76   : > { %1484 = vmatprep.subr.mxu0 %v420_v16  ;;  %1527 = vmatpush3.msra.mxu1 %v549_v15  ;;  %v1409_v50 = vld [vmem:[%s2461_s5] ss:$0 sm:$0xff] }
  0x77   : > { %1485 = vmatpush3.msra.mxu0 %v420_v16  ;;  %1528 = vmatprep.subr.mxu1 %v548_v17 }
  0x78   : > { %1486 = vmatprep.subr.mxu0 %v419_v18  ;;  %1529 = vmatpush3.msra.mxu1 %v548_v17 }
  0x79   : > { %1487 = vmatpush3.msra.mxu0 %v419_v18  ;;  %1530 = vmatprep.subr.mxu1 %v547_v19 }
  0x7a   : > { %1488 = vmatprep.subr.mxu0 %v418_v20  ;;  %1531 = vmatpush3.msra.mxu1 %v547_v19 }
  0x7b   : > { %1489 = vmatpush3.msra.mxu0 %v418_v20  ;;  %1532 = vmatprep.subr.mxu1 %v546_v21 }
  0x7c   : > { %1490 = vmatprep.subr.mxu0 %v417_v22  ;;  %1533 = vmatpush3.msra.mxu1 %v546_v21 }
  0x7d   : > { %1491 = vmatpush3.msra.mxu0 %v417_v22  ;;  %1534 = vmatprep.subr.mxu1 %v545_v23 }
  0x7e   : > { %1492 = vmatprep.subr.mxu0 %v416_v24  ;;  %1535 = vmatpush3.msra.mxu1 %v545_v23 }
  0x7f   : > { %1493 = vmatpush3.msra.mxu0 %v416_v24  ;;  %1536 = vmatprep.subr.mxu1 %v544_v25 }
  0x80   : > { %1494 = vmatprep.subr.mxu0 %v415_v26  ;;  %1500 = vmatprep.mubr.f32.mxu0 %v397_v27 }
  0x81   : > { %1495 = vmatpush3.msra.mxu0 %v415_v26  ;;  %1537 = vmatpush3.msra.mxu1 %v544_v25 }
  0x82   : > { %1496 = vmatprep.subr.mxu0 %v414_v28  ;;  %1538 = vmatprep.subr.mxu1 %v543_v29 }
  0x83   : > { %1497 = vmatpush3.msra.mxu0 %v414_v28  ;;  %1539 = vmatpush3.msra.mxu1 %v543_v29 }
  0x84   : > { %1498 = vmatprep.subr.mxu0 %v413_v30  ;;  %1540 = vmatprep.subr.mxu1 %v542_v31 }
  0x85   : > { %1499 = vmatpush3.msra.mxu0 %v413_v30  ;;  %1541 = vmatpush3.msra.mxu1 %v542_v31 }
  0x86   : > { %1501 = vmatmul.mubr.f32.vlgmr.msra.gmra.mxu0 %v398_v32  ;;  %1542 = vmatprep.subr.mxu1 %v541_v33 }
  0x87   : > { %1543 = vmatpush3.msra.mxu1 %v541_v33  ;;  %1544 = vmatprep.mubr.f32.mxu1 %v405_v34 }
  0x88   : > { %1545 = vmatmul.mubr.f32.vlgmr.msra.gmra.mxu1 %v406_v35  ;;  %1503 = vmatprep.mubr.f32.mxu0 %v399_v36 }
  0x89   : > { %1547 = vmatprep.mubr.f32.mxu1 %v407_v37 }
  0x8a   : > { %1504 = vmatmul.mubr.f32.gmra.mxu0 %v400_v38 }
  0x8b   : > { %1506 = vmatprep.mubr.f32.mxu0 %v401_v39 }
  0x8c   : > { %1548 = vmatmul.mubr.f32.gmra.mxu1 %v408_v40 }
  0x8d   : > { %1550 = vmatprep.mubr.f32.mxu1 %v409_v41 }
  0x8e   : > { %1507 = vmatmul.mubr.f32.gmra.mxu0 %v402_v42 }
  0x8f   : > { %1509 = vmatprep.mubr.f32.mxu0 %v403_v43 }
  0x90   : > { %1551 = vmatmul.mubr.f32.gmra.mxu1 %v410_v44 }
  0x91   : > { %1553 = vmatprep.mubr.f32.mxu1 %v411_v45 }
  0x92   : > { %1510 = vmatmul.mubr.f32.gmra.mxu0 %v404_v46 }
  0x94   : > { %1554 = vmatmul.mubr.f32.gmra.mxu1 %v412_v47 }
 0x146   : > { %v1502_v49 = vpop.f32.mrf.mxu0 }
 0x147   : > { %v508_v51 = vadd.f32 %v1502_v49, %v1408_v48 }
 0x148   : > { %v502_v52 = vpop.f32.mrf.mxu0  ;;  %v1546_v53 = vpop.f32.mrf.mxu1 }
 0x149   : > { %831 = vst.msk [vmem:[%s2106_s21 + $0x8] sm:$0xff] %vm829_vm0, %v508_v51  ;;  %v503_v54 = vadd.f32 %v1408_v48, %v502_v52  ;;  %703 = vrot.lane.b32.xlu1 %v508_v51, %s1852_s15  ;;  %679 = vrot.lane.b32.xlu0 %v508_v51, %s1853_s23  ;;  %v636_v55 = vadd.f32 %v1546_v53, %v1409_v50 }
 0x14a   : > { %v630_v56 = vpop.f32.mrf.mxu1  ;;  %v1505_v57 = vpop.f32.mrf.mxu0 }
 0x14b   : > { %830 = vst.msk [vmem:[%s2106_s21] sm:$0xff] %vm829_vm0, %v503_v54  ;;  %863 = vst.msk [vmem:[%s2114_s14 + $0x8] sm:$0xff] %vm829_vm0, %v636_v55  ;;  %v631_v58 = vadd.f32 %v1409_v50, %v630_v56  ;;  %v518_v59 = vadd.f32 %v1505_v57, %v1408_v48 }
 0x14c   : > { %v512_v60 = vpop.f32.mrf.mxu0  ;;  %v1549_v61 = vpop.f32.mrf.mxu1 }
 0x14d   : > { %727 = vrot.lane.b32.xlu1 %v508_v51, %s1854_s12  ;;  %677 = vrot.lane.b32.xlu0 %v503_v54, %s1853_s23  ;;  %862 = vst.msk [vmem:[%s2114_s14] sm:$0xff] %vm829_vm0, %v631_v58  ;;  %833 = vst.msk [vmem:[%s2106_s21 + $0x18] sm:$0xff] %vm829_vm0, %v518_v59  ;;  %v513_v62 = vadd.f32 %v1408_v48, %v512_v60  ;;  %v646_v63 = vadd.f32 %v1549_v61, %v1409_v50 }
 0x14e   : > { %v640_v0 = vpop.f32.mrf.mxu1  ;;  %v1508_v1 = vpop.f32.mrf.mxu0 }
 0x14f   : > { %832 = vst.msk [vmem:[%s2106_s21 + $0x10] sm:$0xff] %vm829_vm0, %v513_v62  ;;  %865 = vst.msk [vmem:[%s2114_s14 + $0x18] sm:$0xff] %vm829_vm0, %v646_v63  ;;  %v641_v2 = vadd.f32 %v1409_v50, %v640_v0  ;;  %v528_v3 = vadd.f32 %v1508_v1, %v1408_v48 }
 0x150   : > { %v522_v4 = vpop.f32.mrf.mxu0  ;;  %v1552_v5 = vpop.f32.mrf.mxu1 }
 0x151   : > { %759 = vrot.lane.b32.xlu1 %v636_v55, %s1853_s23  ;;  %701 = vrot.lane.b32.xlu0 %v503_v54, %s1852_s15  ;;  %864 = vst.msk [vmem:[%s2114_s14 + $0x10] sm:$0xff] %vm829_vm0, %v641_v2  ;;  %835 = vst.msk [vmem:[%s2106_s21 + $0x28] sm:$0xff] %vm829_vm0, %v528_v3  ;;  %v523_v6 = vadd.f32 %v1408_v48, %v522_v4  ;;  %v656_v7 = vadd.f32 %v1552_v5, %v1409_v50 }
 0x152   : > { %v650_v8 = vpop.f32.mrf.mxu1  ;;  %v1511_v9 = vpop.f32.mrf.mxu0 }
 0x153   : > { %834 = vst.msk [vmem:[%s2106_s21 + $0x20] sm:$0xff] %vm829_vm0, %v523_v6  ;;  %867 = vst.msk [vmem:[%s2114_s14 + $0x28] sm:$0xff] %vm829_vm0, %v656_v7  ;;  %v651_v10 = vadd.f32 %v1409_v50, %v650_v8  ;;  %v538_v11 = vadd.f32 %v1511_v9, %v1408_v48 }
 0x154   : > { %v532_v12 = vpop.f32.mrf.mxu0  ;;  %v1555_v13 = vpop.f32.mrf.mxu1  ;;  %v1006_v5 = vld [vmem:[%s2106_s21 + $0x18] sm:$0xff] (%p1996_p11) }
 0x155   : > { %783 = vrot.lane.b32.xlu1 %v636_v55, %s1852_s15  ;;  %725 = vrot.lane.b32.xlu0 %v503_v54, %s1854_s12  ;;  %866 = vst.msk [vmem:[%s2114_s14 + $0x20] sm:$0xff] %vm829_vm0, %v651_v10  ;;  %837 = vst.msk [vmem:[%s2106_s21 + $0x38] sm:$0xff] %vm829_vm0, %v538_v11  ;;  %v533_v14 = vadd.f32 %v1408_v48, %v532_v12  ;;  %v666_v15 = vadd.f32 %v1555_v13, %v1409_v50 }
 0x156   : > { %v660_v16 = vpop.f32.mrf.mxu1  ;;  %v1004_v4 = vld [vmem:[%s2106_s21 + $0x10] sm:$0xff] (%p1996_p11)  ;;  %1007 = vst [vmem:[%s2302_s11 + $0x18] sm:$0xff] (%p1996_p11), %v1006_v5 }
 0x157   : > { %836 = vst.msk [vmem:[%s2106_s21 + $0x30] sm:$0xff] %vm829_vm0, %v533_v14  ;;  %869 = vst.msk [vmem:[%s2114_s14 + $0x38] sm:$0xff] %vm829_vm0, %v666_v15  ;;  %v661_v17 = vadd.f32 %v1409_v50, %v660_v16 }
 0x158   : > { %1005 = vst [vmem:[%s2302_s11 + $0x10] sm:$0xff] (%p1996_p11), %v1004_v4 }
 0x159   : > { %807 = vrot.lane.b32.xlu1 %v636_v55, %s1854_s12  ;;  %757 = vrot.lane.b32.xlu0 %v631_v58, %s1853_s23  ;;  %868 = vst.msk [vmem:[%s2114_s14 + $0x30] sm:$0xff] %vm829_vm0, %v661_v17 }
 0x15c   : > { %v1014_v9 = vld [vmem:[%s2106_s21 + $0x38] sm:$0xff] (%p1996_p11) }
 0x15d   : > { %683 = vrot.lane.b32.xlu1 %v518_v59, %s1853_s23  ;;  %781 = vrot.lane.b32.xlu0 %v631_v58, %s1852_s15  ;;  %1015 = vst [vmem:[%s2302_s11 + $0x38] sm:$0xff] (%p1996_p11), %v1014_v9 }
 0x15e   : > { %v1012_v8 = vld [vmem:[%s2106_s21 + $0x30] sm:$0xff] (%p1996_p11) }
 0x15f   : > { %1013 = vst [vmem:[%s2302_s11 + $0x30] sm:$0xff] (%p1996_p11), %v1012_v8 }
 0x161   : > { %707 = vrot.lane.b32.xlu1 %v518_v59, %s1852_s15  ;;  %805 = vrot.lane.b32.xlu0 %v631_v58, %s1854_s12 }
 0x165   : > { %731 = vrot.lane.b32.xlu1 %v518_v59, %s1854_s12  ;;  %705 = vrot.lane.b32.xlu0 %v513_v62, %s1852_s15 }
 0x169   : > { %763 = vrot.lane.b32.xlu1 %v646_v63, %s1853_s23  ;;  %729 = vrot.lane.b32.xlu0 %v513_v62, %s1854_s12 }
 0x16d   : > { %787 = vrot.lane.b32.xlu1 %v646_v63, %s1852_s15  ;;  %761 = vrot.lane.b32.xlu0 %v641_v2, %s1853_s23 }
 0x171   : > { %811 = vrot.lane.b32.xlu1 %v646_v63, %s1854_s12  ;;  %785 = vrot.lane.b32.xlu0 %v641_v2, %s1852_s15 }
 0x175   : > { %681 = vrot.lane.b32.xlu1 %v513_v62, %s1853_s23  ;;  %809 = vrot.lane.b32.xlu0 %v641_v2, %s1854_s12  ;;  %v1000_v2 = vld [vmem:[%s2106_s21] sm:$0xff] (%p1996_p11) }
 0x176   : > { %1001 = vst [vmem:[%s2302_s11] sm:$0xff] (%p1996_p11), %v1000_v2 }
 0x179   : > { %687 = vrot.lane.b32.xlu1 %v528_v3, %s1853_s23  ;;  %685 = vrot.lane.b32.xlu0 %v523_v6, %s1853_s23 }
 0x17d   : > { %711 = vrot.lane.b32.xlu1 %v528_v3, %s1852_s15  ;;  %709 = vrot.lane.b32.xlu0 %v523_v6, %s1852_s15 }
 0x181   : > { %735 = vrot.lane.b32.xlu1 %v528_v3, %s1854_s12  ;;  %733 = vrot.lane.b32.xlu0 %v523_v6, %s1854_s12  ;;  %v1002_v3 = vld [vmem:[%s2106_s21 + $0x8] sm:$0xff] (%p1996_p11)  ;;  %v1008_v6 = vld [vmem:[%s2106_s21 + $0x20] sm:$0xff] (%p1996_p11) }
 0x182   : > { %1003 = vst [vmem:[%s2302_s11 + $0x8] sm:$0xff] (%p1996_p11), %v1002_v3  ;;  %1009 = vst [vmem:[%s2302_s11 + $0x20] sm:$0xff] (%p1996_p11), %v1008_v6 }
 0x185   : > { %767 = vrot.lane.b32.xlu1 %v656_v7, %s1853_s23  ;;  %765 = vrot.lane.b32.xlu0 %v651_v10, %s1853_s23 }
 0x189   : > { %791 = vrot.lane.b32.xlu1 %v656_v7, %s1852_s15  ;;  %789 = vrot.lane.b32.xlu0 %v651_v10, %s1852_s15 }
 0x18d   : > { %815 = vrot.lane.b32.xlu1 %v656_v7, %s1854_s12  ;;  %813 = vrot.lane.b32.xlu0 %v651_v10, %s1854_s12  ;;  %v1010_v7 = vld [vmem:[%s2106_s21 + $0x28] sm:$0xff] (%p1996_p11) }
 0x18e   : > { %1011 = vst [vmem:[%s2302_s11 + $0x28] sm:$0xff] (%p1996_p11), %v1010_v7 }
 0x191   : > { %691 = vrot.lane.b32.xlu1 %v538_v11, %s1853_s23  ;;  %689 = vrot.lane.b32.xlu0 %v533_v14, %s1853_s23 }
 0x195   : > { %715 = vrot.lane.b32.xlu1 %v538_v11, %s1852_s15  ;;  %713 = vrot.lane.b32.xlu0 %v533_v14, %s1852_s15 }
 0x199   : > { %739 = vrot.lane.b32.xlu1 %v538_v11, %s1854_s12  ;;  %737 = vrot.lane.b32.xlu0 %v533_v14, %s1854_s12 }
 0x19d   : > { %771 = vrot.lane.b32.xlu1 %v666_v15, %s1853_s23  ;;  %769 = vrot.lane.b32.xlu0 %v661_v17, %s1853_s23 }
 0x1a1   : > { %795 = vrot.lane.b32.xlu1 %v666_v15, %s1852_s15  ;;  %793 = vrot.lane.b32.xlu0 %v661_v17, %s1852_s15 }
 0x1a5   : > { %819 = vrot.lane.b32.xlu1 %v666_v15, %s1854_s12  ;;  %817 = vrot.lane.b32.xlu0 %v661_v17, %s1854_s12 }
 0x1bb   : > { %v704_v18 = vpop.permute.xlu1 %703  ;;  %v680_v19 = vpop.permute.xlu0 %679 }
 0x1bc   : > { %847 = vst.msk [vmem:[%s2106_s21 + $0x88] sm:$0xff] %vm829_vm0, %v704_v18  ;;  %839 = vst.msk [vmem:[%s2106_s21 + $0x48] sm:$0xff] %vm829_vm0, %v680_v19 }
 0x1bf   : > { %v728_v20 = vpop.permute.xlu1 %727  ;;  %v678_v21 = vpop.permute.xlu0 %677 }
 0x1c0   : > { %855 = vst.msk [vmem:[%s2106_s21 + $0xc8] sm:$0xff] %vm829_vm0, %v728_v20  ;;  %838 = vst.msk [vmem:[%s2106_s21 + $0x40] sm:$0xff] %vm829_vm0, %v678_v21 }
 0x1c3   : > { %v760_v22 = vpop.permute.xlu1 %759  ;;  %v702_v23 = vpop.permute.xlu0 %701  ;;  %v1018_v11 = vld [vmem:[%s2106_s21 + $0x48] sm:$0xff] (%p1996_p11) }
 0x1c4   : > { %871 = vst.msk [vmem:[%s2114_s14 + $0x48] sm:$0xff] %vm829_vm0, %v760_v22  ;;  %846 = vst.msk [vmem:[%s2106_s21 + $0x80] sm:$0xff] %vm829_vm0, %v702_v23  ;;  %v1034_v19 = vld [vmem:[%s2106_s21 + $0x88] sm:$0xff] (%p1996_p11) }
 0x1c5   : > { %1019 = vst [vmem:[%s2302_s11 + $0x108] sm:$0xff] (%p1996_p11), %v1018_v11  ;;  %1035 = vst [vmem:[%s2302_s11 + $0x208] sm:$0xff] (%p1996_p11), %v1034_v19 }
 0x1c7   : > { %v784_v24 = vpop.permute.xlu1 %783  ;;  %v726_v25 = vpop.permute.xlu0 %725  ;;  %v1016_v10 = vld [vmem:[%s2106_s21 + $0x40] sm:$0xff] (%p1996_p11) }
 0x1c8   : > { %879 = vst.msk [vmem:[%s2114_s14 + $0x88] sm:$0xff] %vm829_vm0, %v784_v24  ;;  %854 = vst.msk [vmem:[%s2106_s21 + $0xc0] sm:$0xff] %vm829_vm0, %v726_v25 }
 0x1c9   : > { %1017 = vst [vmem:[%s2302_s11 + $0x100] sm:$0xff] (%p1996_p11), %v1016_v10 }
 0x1cb   : > { %v808_v26 = vpop.permute.xlu1 %807  ;;  %v758_v27 = vpop.permute.xlu0 %757  ;;  %v1032_v18 = vld [vmem:[%s2106_s21 + $0x80] sm:$0xff] (%p1996_p11) }
 0x1cc   : > { %887 = vst.msk [vmem:[%s2114_s14 + $0xc8] sm:$0xff] %vm829_vm0, %v808_v26  ;;  %870 = vst.msk [vmem:[%s2114_s14 + $0x40] sm:$0xff] %vm829_vm0, %v758_v27  ;;  %v1050_v27 = vld [vmem:[%s2106_s21 + $0xc8] sm:$0xff] (%p1996_p11) }
 0x1cd   : > { %1033 = vst [vmem:[%s2302_s11 + $0x200] sm:$0xff] (%p1996_p11), %v1032_v18  ;;  %1051 = vst [vmem:[%s2302_s11 + $0x308] sm:$0xff] (%p1996_p11), %v1050_v27 }
 0x1cf   : > { %v684_v28 = vpop.permute.xlu1 %683  ;;  %v782_v29 = vpop.permute.xlu0 %781  ;;  %v1048_v26 = vld [vmem:[%s2106_s21 + $0xc0] sm:$0xff] (%p1996_p11) }
 0x1d0   : > { %841 = vst.msk [vmem:[%s2106_s21 + $0x58] sm:$0xff] %vm829_vm0, %v684_v28  ;;  %878 = vst.msk [vmem:[%s2114_s14 + $0x80] sm:$0xff] %vm829_vm0, %v782_v29 }
 0x1d1   : > { %1049 = vst [vmem:[%s2302_s11 + $0x300] sm:$0xff] (%p1996_p11), %v1048_v26 }
 0x1d3   : > { %v708_v30 = vpop.permute.xlu1 %707  ;;  %v806_v31 = vpop.permute.xlu0 %805 }
 0x1d4   : > { %849 = vst.msk [vmem:[%s2106_s21 + $0x98] sm:$0xff] %vm829_vm0, %v708_v30  ;;  %886 = vst.msk [vmem:[%s2114_s14 + $0xc0] sm:$0xff] %vm829_vm0, %v806_v31 }
 0x1d7   : > { %v732_v32 = vpop.permute.xlu1 %731  ;;  %v706_v33 = vpop.permute.xlu0 %705  ;;  %v1022_v13 = vld [vmem:[%s2106_s21 + $0x58] sm:$0xff] (%p1996_p11) }
 0x1d8   : > { %857 = vst.msk [vmem:[%s2106_s21 + $0xd8] sm:$0xff] %vm829_vm0, %v732_v32  ;;  %848 = vst.msk [vmem:[%s2106_s21 + $0x90] sm:$0xff] %vm829_vm0, %v706_v33 }
 0x1d9   : > { %1023 = vst [vmem:[%s2302_s11 + $0x118] sm:$0xff] (%p1996_p11), %v1022_v13 }
 0x1db   : > { %v764_v34 = vpop.permute.xlu1 %763  ;;  %v730_v35 = vpop.permute.xlu0 %729  ;;  %v1038_v21 = vld [vmem:[%s2106_s21 + $0x98] sm:$0xff] (%p1996_p11) }
 0x1dc   : > { %873 = vst.msk [vmem:[%s2114_s14 + $0x58] sm:$0xff] %vm829_vm0, %v764_v34  ;;  %856 = vst.msk [vmem:[%s2106_s21 + $0xd0] sm:$0xff] %vm829_vm0, %v730_v35 }
 0x1dd   : > { %1039 = vst [vmem:[%s2302_s11 + $0x218] sm:$0xff] (%p1996_p11), %v1038_v21 }
 0x1df   : > { %v788_v36 = vpop.permute.xlu1 %787  ;;  %v762_v37 = vpop.permute.xlu0 %761  ;;  %v1036_v20 = vld [vmem:[%s2106_s21 + $0x90] sm:$0xff] (%p1996_p11)  ;;  %v1054_v29 = vld [vmem:[%s2106_s21 + $0xd8] sm:$0xff] (%p1996_p11) }
 0x1e0   : > { %881 = vst.msk [vmem:[%s2114_s14 + $0x98] sm:$0xff] %vm829_vm0, %v788_v36  ;;  %872 = vst.msk [vmem:[%s2114_s14 + $0x50] sm:$0xff] %vm829_vm0, %v762_v37 }
 0x1e1   : > { %1037 = vst [vmem:[%s2302_s11 + $0x210] sm:$0xff] (%p1996_p11), %v1036_v20  ;;  %1055 = vst [vmem:[%s2302_s11 + $0x318] sm:$0xff] (%p1996_p11), %v1054_v29 }
 0x1e3   : > { %v812_v38 = vpop.permute.xlu1 %811  ;;  %v786_v39 = vpop.permute.xlu0 %785  ;;  %v1052_v28 = vld [vmem:[%s2106_s21 + $0xd0] sm:$0xff] (%p1996_p11) }
 0x1e4   : > { %889 = vst.msk [vmem:[%s2114_s14 + $0xd8] sm:$0xff] %vm829_vm0, %v812_v38  ;;  %880 = vst.msk [vmem:[%s2114_s14 + $0x90] sm:$0xff] %vm829_vm0, %v786_v39 }
 0x1e5   : > { %1053 = vst [vmem:[%s2302_s11 + $0x310] sm:$0xff] (%p1996_p11), %v1052_v28 }
 0x1e7   : > { %v682_v40 = vpop.permute.xlu1 %681  ;;  %v810_v41 = vpop.permute.xlu0 %809 }
 0x1e8   : > { %840 = vst.msk [vmem:[%s2106_s21 + $0x50] sm:$0xff] %vm829_vm0, %v682_v40  ;;  %888 = vst.msk [vmem:[%s2114_s14 + $0xd0] sm:$0xff] %vm829_vm0, %v810_v41 }
 0x1eb   : > { %v688_v42 = vpop.permute.xlu1 %687  ;;  %v686_v43 = vpop.permute.xlu0 %685 }
 0x1ec   : > { %843 = vst.msk [vmem:[%s2106_s21 + $0x68] sm:$0xff] %vm829_vm0, %v688_v42  ;;  %842 = vst.msk [vmem:[%s2106_s21 + $0x60] sm:$0xff] %vm829_vm0, %v686_v43 }
 0x1ef   : > { %v712_v44 = vpop.permute.xlu1 %711  ;;  %v710_v45 = vpop.permute.xlu0 %709  ;;  %v1020_v12 = vld [vmem:[%s2106_s21 + $0x50] sm:$0xff] (%p1996_p11) }
 0x1f0   : > { %851 = vst.msk [vmem:[%s2106_s21 + $0xa8] sm:$0xff] %vm829_vm0, %v712_v44  ;;  %850 = vst.msk [vmem:[%s2106_s21 + $0xa0] sm:$0xff] %vm829_vm0, %v710_v45 }
 0x1f1   : > { %1021 = vst [vmem:[%s2302_s11 + $0x110] sm:$0xff] (%p1996_p11), %v1020_v12 }
 0x1f3   : > { %v736_v46 = vpop.permute.xlu1 %735  ;;  %v734_v47 = vpop.permute.xlu0 %733  ;;  %v1024_v14 = vld [vmem:[%s2106_s21 + $0x60] sm:$0xff] (%p1996_p11)  ;;  %v1026_v15 = vld [vmem:[%s2106_s21 + $0x68] sm:$0xff] (%p1996_p11) }
 0x1f4   : > { %859 = vst.msk [vmem:[%s2106_s21 + $0xe8] sm:$0xff] %vm829_vm0, %v736_v46  ;;  %858 = vst.msk [vmem:[%s2106_s21 + $0xe0] sm:$0xff] %vm829_vm0, %v734_v47 }
 0x1f5   : > { %1025 = vst [vmem:[%s2302_s11 + $0x120] sm:$0xff] (%p1996_p11), %v1024_v14  ;;  %1027 = vst [vmem:[%s2302_s11 + $0x128] sm:$0xff] (%p1996_p11), %v1026_v15 }
 0x1f7   : > { %v768_v48 = vpop.permute.xlu1 %767  ;;  %v766_v49 = vpop.permute.xlu0 %765  ;;  %v1040_v22 = vld [vmem:[%s2106_s21 + $0xa0] sm:$0xff] (%p1996_p11)  ;;  %v1042_v23 = vld [vmem:[%s2106_s21 + $0xa8] sm:$0xff] (%p1996_p11) }
 0x1f8   : > { %875 = vst.msk [vmem:[%s2114_s14 + $0x68] sm:$0xff] %vm829_vm0, %v768_v48  ;;  %874 = vst.msk [vmem:[%s2114_s14 + $0x60] sm:$0xff] %vm829_vm0, %v766_v49 }
 0x1f9   : > { %1041 = vst [vmem:[%s2302_s11 + $0x220] sm:$0xff] (%p1996_p11), %v1040_v22  ;;  %1043 = vst [vmem:[%s2302_s11 + $0x228] sm:$0xff] (%p1996_p11), %v1042_v23 }
 0x1fb   : > { %v792_v50 = vpop.permute.xlu1 %791  ;;  %v790_v51 = vpop.permute.xlu0 %789  ;;  %v1056_v30 = vld [vmem:[%s2106_s21 + $0xe0] sm:$0xff] (%p1996_p11)  ;;  %v1058_v31 = vld [vmem:[%s2106_s21 + $0xe8] sm:$0xff] (%p1996_p11) }
 0x1fc   : > { %883 = vst.msk [vmem:[%s2114_s14 + $0xa8] sm:$0xff] %vm829_vm0, %v792_v50  ;;  %882 = vst.msk [vmem:[%s2114_s14 + $0xa0] sm:$0xff] %vm829_vm0, %v790_v51 }
 0x1fd   : > { %1057 = vst [vmem:[%s2302_s11 + $0x320] sm:$0xff] (%p1996_p11), %v1056_v30  ;;  %1059 = vst [vmem:[%s2302_s11 + $0x328] sm:$0xff] (%p1996_p11), %v1058_v31 }
 0x1ff   : > { %v816_v52 = vpop.permute.xlu1 %815  ;;  %v814_v53 = vpop.permute.xlu0 %813 }
 0x200   : > { %891 = vst.msk [vmem:[%s2114_s14 + $0xe8] sm:$0xff] %vm829_vm0, %v816_v52  ;;  %890 = vst.msk [vmem:[%s2114_s14 + $0xe0] sm:$0xff] %vm829_vm0, %v814_v53 }
 0x203   : > { %v692_v54 = vpop.permute.xlu1 %691  ;;  %v690_v55 = vpop.permute.xlu0 %689 }
 0x204   : > { %845 = vst.msk [vmem:[%s2106_s21 + $0x78] sm:$0xff] %vm829_vm0, %v692_v54  ;;  %844 = vst.msk [vmem:[%s2106_s21 + $0x70] sm:$0xff] %vm829_vm0, %v690_v55 }
 0x207   : > { %v716_v56 = vpop.permute.xlu1 %715  ;;  %v714_v57 = vpop.permute.xlu0 %713 }
 0x208   : > { %853 = vst.msk [vmem:[%s2106_s21 + $0xb8] sm:$0xff] %vm829_vm0, %v716_v56  ;;  %852 = vst.msk [vmem:[%s2106_s21 + $0xb0] sm:$0xff] %vm829_vm0, %v714_v57 }
 0x20b   : > { %v740_v58 = vpop.permute.xlu1 %739  ;;  %v738_v59 = vpop.permute.xlu0 %737  ;;  %v1028_v16 = vld [vmem:[%s2106_s21 + $0x70] sm:$0xff] (%p1996_p11)  ;;  %v1030_v17 = vld [vmem:[%s2106_s21 + $0x78] sm:$0xff] (%p1996_p11) }
 0x20c   : > { %861 = vst.msk [vmem:[%s2106_s21 + $0xf8] sm:$0xff] %vm829_vm0, %v740_v58  ;;  %860 = vst.msk [vmem:[%s2106_s21 + $0xf0] sm:$0xff] %vm829_vm0, %v738_v59 }
 0x20d   : > { %1029 = vst [vmem:[%s2302_s11 + $0x130] sm:$0xff] (%p1996_p11), %v1028_v16  ;;  %1031 = vst [vmem:[%s2302_s11 + $0x138] sm:$0xff] (%p1996_p11), %v1030_v17 }
 0x20f   : > { %v772_v60 = vpop.permute.xlu1 %771  ;;  %v770_v61 = vpop.permute.xlu0 %769  ;;  %v1044_v24 = vld [vmem:[%s2106_s21 + $0xb0] sm:$0xff] (%p1996_p11)  ;;  %v1046_v25 = vld [vmem:[%s2106_s21 + $0xb8] sm:$0xff] (%p1996_p11) }
 0x210   : > { %877 = vst.msk [vmem:[%s2114_s14 + $0x78] sm:$0xff] %vm829_vm0, %v772_v60  ;;  %876 = vst.msk [vmem:[%s2114_s14 + $0x70] sm:$0xff] %vm829_vm0, %v770_v61 }
 0x211   : > { %1045 = vst [vmem:[%s2302_s11 + $0x230] sm:$0xff] (%p1996_p11), %v1044_v24  ;;  %1047 = vst [vmem:[%s2302_s11 + $0x238] sm:$0xff] (%p1996_p11), %v1046_v25 }
 0x213   : > { %v796_v62 = vpop.permute.xlu1 %795  ;;  %v794_v63 = vpop.permute.xlu0 %793  ;;  %v1060_v32 = vld [vmem:[%s2106_s21 + $0xf0] sm:$0xff] (%p1996_p11)  ;;  %v1062_v33 = vld [vmem:[%s2106_s21 + $0xf8] sm:$0xff] (%p1996_p11) }
 0x214   : > { %885 = vst.msk [vmem:[%s2114_s14 + $0xb8] sm:$0xff] %vm829_vm0, %v796_v62  ;;  %884 = vst.msk [vmem:[%s2114_s14 + $0xb0] sm:$0xff] %vm829_vm0, %v794_v63  ;;  %904 = sbr.rel (!%p1996_p11) target bundleno = 537 (0x219), region = 64 }
 0x215   : > { %1061 = vst [vmem:[%s2302_s11 + $0x330] sm:$0xff] (%p1996_p11), %v1060_v32  ;;  %1063 = vst [vmem:[%s2302_s11 + $0x338] sm:$0xff] (%p1996_p11), %v1062_v33 }
 0x217   : > { %v820_v0 = vpop.permute.xlu1 %819  ;;  %v818_v1 = vpop.permute.xlu0 %817 }
 0x218   : > { %893 = vst.msk [vmem:[%s2114_s14 + $0xf8] sm:$0xff] %vm829_vm0, %v820_v0  ;;  %892 = vst.msk [vmem:[%s2114_s14 + $0xf0] sm:$0xff] %vm829_vm0, %v818_v1 }
 0x219 PF: > { %1069 = sbr.rel (!%p1996_p11) target bundleno = 561 (0x231), region = 102  ;;  %s1415_s19 = sshll.u32 (%p1996_p11), %s1828_s27, 3  ;;  %v1165_v34 = vld [vmem:[%s2114_s14] sm:$0xff] (%p1996_p11)  ;;  %v1167_v35 = vld [vmem:[%s2114_s14 + $0x8] sm:$0xff] (%p1996_p11)  ;;  %v1169_v36 = vld [vmem:[%s2114_s14 + $0x10] sm:$0xff] (%p1996_p11) }
 0x21a   : > { %s1416_s9 = sshll.u32 (%p1996_p11), %s1832_s28, 7  ;;  %v1171_v37 = vld [vmem:[%s2114_s14 + $0x18] sm:$0xff] (%p1996_p11)  ;;  %v1173_v38 = vld [vmem:[%s2114_s14 + $0x20] sm:$0xff] (%p1996_p11)  ;;  %v1175_v39 = vld [vmem:[%s2114_s14 + $0x28] sm:$0xff] (%p1996_p11)  ;;  %s2489_s20 = sld [smem:[#allocation21_spill]] (%p1996_p11) }
 0x21b   : > { %s1072_s17 = sadd.s32 (%p1996_p11), %s1416_s9, %s1415_s19  ;;  %v1177_v40 = vld [vmem:[%s2114_s14 + $0x30] sm:$0xff] (%p1996_p11)  ;;  %v1179_v41 = vld [vmem:[%s2114_s14 + $0x38] sm:$0xff] (%p1996_p11)  ;;  %v1181_v42 = vld [vmem:[%s2114_s14 + $0x40] sm:$0xff] (%p1996_p11) }
 0x21c   : > { %s1417_s10 = sshll.u32 (%p1996_p11), %s1072_s17, 3  ;;  %v1183_v43 = vld [vmem:[%s2114_s14 + $0x48] sm:$0xff] (%p1996_p11)  ;;  %v1185_v44 = vld [vmem:[%s2114_s14 + $0x50] sm:$0xff] (%p1996_p11)  ;;  %v1187_v45 = vld [vmem:[%s2114_s14 + $0x58] sm:$0xff] (%p1996_p11) }
 0x21d   : > { %v1189_v46 = vld [vmem:[%s2114_s14 + $0x60] sm:$0xff] (%p1996_p11)  ;;  %v1191_v47 = vld [vmem:[%s2114_s14 + $0x68] sm:$0xff] (%p1996_p11)  ;;  %v1193_v48 = vld [vmem:[%s2114_s14 + $0x70] sm:$0xff] (%p1996_p11) }
 0x21e   : > { %v1195_v49 = vld [vmem:[%s2114_s14 + $0x78] sm:$0xff]  ;;  %v1197_v50 = vld [vmem:[%s2114_s14 + $0x80] sm:$0xff]  ;;  %v1199_v51 = vld [vmem:[%s2114_s14 + $0x88] sm:$0xff] }
 0x21f   : > { %v1201_v52 = vld [vmem:[%s2114_s14 + $0x90] sm:$0xff]  ;;  %v1203_v53 = vld [vmem:[%s2114_s14 + $0x98] sm:$0xff]  ;;  %v1205_v54 = vld [vmem:[%s2114_s14 + $0xa0] sm:$0xff] }
 0x220   : > { %s2375_s21 = scalar_lea.vmem %s2489_s20, %s1417_s10  ;;  %v1207_v55 = vld [vmem:[%s2114_s14 + $0xa8] sm:$0xff]  ;;  %v1209_v56 = vld [vmem:[%s2114_s14 + $0xb0] sm:$0xff]  ;;  %v1211_v57 = vld [vmem:[%s2114_s14 + $0xb8] sm:$0xff] }
 0x221   : > { %1166 = vst [vmem:[%s2375_s21] sm:$0xff] %v1165_v34  ;;  %1168 = vst [vmem:[%s2375_s21 + $0x8] sm:$0xff] %v1167_v35  ;;  %v1213_v58 = vld [vmem:[%s2114_s14 + $0xc0] sm:$0xff]  ;;  %v1215_v59 = vld [vmem:[%s2114_s14 + $0xc8] sm:$0xff] }
 0x222   : > { %1170 = vst [vmem:[%s2375_s21 + $0x10] sm:$0xff] %v1169_v36  ;;  %1172 = vst [vmem:[%s2375_s21 + $0x18] sm:$0xff] %v1171_v37  ;;  %v1217_v60 = vld [vmem:[%s2114_s14 + $0xd0] sm:$0xff]  ;;  %v1219_v61 = vld [vmem:[%s2114_s14 + $0xd8] sm:$0xff] }
 0x223   : > { %1174 = vst [vmem:[%s2375_s21 + $0x20] sm:$0xff] %v1173_v38  ;;  %1176 = vst [vmem:[%s2375_s21 + $0x28] sm:$0xff] %v1175_v39  ;;  %v1221_v62 = vld [vmem:[%s2114_s14 + $0xe0] sm:$0xff]  ;;  %v1223_v63 = vld [vmem:[%s2114_s14 + $0xe8] sm:$0xff] }
 0x224   : > { %1178 = vst [vmem:[%s2375_s21 + $0x30] sm:$0xff] %v1177_v40  ;;  %1180 = vst [vmem:[%s2375_s21 + $0x38] sm:$0xff] %v1179_v41  ;;  %v1225_v0 = vld [vmem:[%s2114_s14 + $0xf0] sm:$0xff]  ;;  %v1227_v1 = vld [vmem:[%s2114_s14 + $0xf8] sm:$0xff] }
 0x225   : > { %1182 = vst [vmem:[%s2375_s21 + $0x100] sm:$0xff] %v1181_v42  ;;  %1184 = vst [vmem:[%s2375_s21 + $0x108] sm:$0xff] %v1183_v43 }
 0x226   : > { %1186 = vst [vmem:[%s2375_s21 + $0x110] sm:$0xff] %v1185_v44  ;;  %1188 = vst [vmem:[%s2375_s21 + $0x118] sm:$0xff] %v1187_v45 }
 0x227   : > { %1190 = vst [vmem:[%s2375_s21 + $0x120] sm:$0xff] %v1189_v46  ;;  %1192 = vst [vmem:[%s2375_s21 + $0x128] sm:$0xff] %v1191_v47 }
 0x228   : > { %1194 = vst [vmem:[%s2375_s21 + $0x130] sm:$0xff] %v1193_v48  ;;  %1196 = vst [vmem:[%s2375_s21 + $0x138] sm:$0xff] %v1195_v49 }
 0x229   : > { %1198 = vst [vmem:[%s2375_s21 + $0x200] sm:$0xff] %v1197_v50  ;;  %1200 = vst [vmem:[%s2375_s21 + $0x208] sm:$0xff] %v1199_v51 }
 0x22a   : > { %1202 = vst [vmem:[%s2375_s21 + $0x210] sm:$0xff] %v1201_v52  ;;  %1204 = vst [vmem:[%s2375_s21 + $0x218] sm:$0xff] %v1203_v53 }
 0x22b   : > { %1206 = vst [vmem:[%s2375_s21 + $0x220] sm:$0xff] %v1205_v54  ;;  %1208 = vst [vmem:[%s2375_s21 + $0x228] sm:$0xff] %v1207_v55 }
 0x22c   : > { %1210 = vst [vmem:[%s2375_s21 + $0x230] sm:$0xff] %v1209_v56  ;;  %1212 = vst [vmem:[%s2375_s21 + $0x238] sm:$0xff] %v1211_v57 }
 0x22d   : > { %1214 = vst [vmem:[%s2375_s21 + $0x300] sm:$0xff] %v1213_v58  ;;  %1216 = vst [vmem:[%s2375_s21 + $0x308] sm:$0xff] %v1215_v59 }
 0x22e   : > { %1218 = vst [vmem:[%s2375_s21 + $0x310] sm:$0xff] %v1217_v60  ;;  %1220 = vst [vmem:[%s2375_s21 + $0x318] sm:$0xff] %v1219_v61 }
 0x22f   : > { %1222 = vst [vmem:[%s2375_s21 + $0x320] sm:$0xff] %v1221_v62  ;;  %1224 = vst [vmem:[%s2375_s21 + $0x328] sm:$0xff] %v1223_v63 }
 0x230   : > { %1226 = vst [vmem:[%s2375_s21 + $0x330] sm:$0xff] %v1225_v0  ;;  %1228 = vst [vmem:[%s2375_s21 + $0x338] sm:$0xff] %v1227_v1 }
 0x231 PF: > { %s25_s8 = sadd.s32 1, %s1844_s8   ;;  %s2490_s28 = sld [smem:[#allocation15_spill]] }
 0x232   : > { %p22_p1 = scmp.ge.s32.totalorder %s25_s8, 10   ;;  %s2491_s15 = sld [smem:[#allocation16_spill]] }
 0x233   : > { %s2492_s30 = sld [smem:[#allocation17_spill]]  ;;  %s2493_s24 = smov %s1820_s25 }
 0x234   : > { %s2494_s25 = smov %s1824_s26  ;;  %s2495_s26 = smov %s2016_s4 }
 0x235   : > { %s2496_s27 = smov %s1836_s29  ;;  %24 = sbr.rel (!%p22_p1) target bundleno = 13 (0xd), region = 193 }
 0x238   : > { %s2497_s29 = smov %s2491_s15 }
 0x23a   :  { %1251 = vsyncpa [#allocation3], 1 }
 0x23b   :  { %1253 = vsyncpa [#allocation3 + $0x1], 1 }
 0x23c   :  { %1254 = vsyncpa [#allocation5], 1 }
 0x23d   :  { %1256 = vsyncpa [#allocation5 + $0x1], 1 }
 0x23e   :  { %1257 = vsyncpa [#allocation8], 1 }

</bundles_post_ra>
